<compile_context>
chip_gen: v7x
topology: tpu7x:2x2x1
jax: 0.10.0
libtpu: 0.0.40
codegen_flags: <defaults>
</compile_context>

<pallas_src>
import numpy as np
import jax
import jax.numpy as jnp
from jax.experimental import pallas as pl
from jax.experimental.pallas import tpu as pltpu


# --------------------------------------------------------------------------------------
# Kernel: one grid step = one block of BBLK batches, rows = (batch, channel), lanes = N*T
# --------------------------------------------------------------------------------------
def _res_projection_kernel(x_ref, a_ref, wvg_ref, bvg_ref, wgp_ref, bgp_ref,
                           wup_ref, bup_ref, o_ref):
    RB, NT = x_ref.shape                     # RB = BBLK * C rows, NT = N*T lanes
    L = wvg_ref.shape[0]
    H = wup_ref.shape[1]

    x = x_ref[...].astype(jnp.float32)       # (RB, NT), lane-dense

    for l in range(L):                       # layers are sequentially data-dependent
        res = x
        xb = x.astype(jnp.bfloat16)

        # -------- gated_mlp (time_proj[l]) : fused [value | gate] in ONE matmul --------
        vg = jnp.dot(xb, wvg_ref[l], preferred_element_type=jnp.float32) + bvg_ref[l]
        value = vg[:, :NT]
        gate = jax.nn.sigmoid(vg[:, NT:])
        xt = jnp.tanh(gate * value + (1.0 - gate) * x)        # == F.tanh(time_proj(x))
        xtb = xt.astype(jnp.bfloat16)

        # -------- gated_gcn (chan_proj[l]) --------
        # channel mix for ALL heads in one matmul; a_ref[l] = vstack_h kron(I_Bblk, adj_h)
        g_all = jnp.dot(a_ref[l], xtb, preferred_element_type=jnp.float32)  # (H*RB, NT)
        gb = g_all.astype(jnp.bfloat16)

        # update_proj: sum over heads of per-head block-diagonal time projections
        upd = jnp.dot(gb[0:RB], wup_ref[l, 0], preferred_element_type=jnp.float32)
        for h in range(1, H):
            upd = upd + jnp.dot(gb[h * RB:(h + 1) * RB], wup_ref[l, h],
                                preferred_element_type=jnp.float32)
        upd = upd + bup_ref[l]                                              # (RB, NT)

        gate2 = jax.nn.sigmoid(
            jnp.dot(xtb, wgp_ref[l], preferred_element_type=jnp.float32) + bgp_ref[l])
        y = gate2 * upd + (1.0 - gate2) * xt

        x = res + jnp.tanh(y)                                               # residual

    o_ref[...] = x.astype(o_ref.dtype)


# --------------------------------------------------------------------------------------
# Wrapper: all parameter-only re-layouts / the input-independent adjacency happen here
# --------------------------------------------------------------------------------------
def _pick_bblk(B, C):
    # batches per grid step: rows must be whole channel groups; prefer sublane-full blocks
    for cand in range(1, B):
        if B % cand == 0 and (cand * C) % 8 == 0:
            return cand
    return B


def _prep_params(params, N, BBLK):
    L, T, _ = params["wu"].shape
    H, C = params["n1"].shape[1], params["n1"].shape[2]
    NT = N * T
    eyeN = jnp.eye(N, dtype=jnp.float32)

    def block_diag(w):
        # (L, T_out, T_in) torch-Linear layout -> (L, N*T_in, N*T_out) = kron(I_N, W.T)
        wT = jnp.swapaxes(w, -1, -2)
        return jnp.einsum("ab,lio->laibo", eyeN, wT).reshape(L, NT, NT)

    # fused gated_mlp weight: [value | gate]
    w_vg = jnp.concatenate([block_diag(params["wu"]), block_diag(params["wg"])],
                           axis=-1).astype(jnp.bfloat16)                  # (L, NT, 2NT)
    b_vg = jnp.concatenate([jnp.tile(params["bu"], (1, 1, N)),
                            jnp.tile(params["bg"], (1, 1, N))], axis=-1)  # (L, 1, 2NT) f32

    # gcn gate_proj
    w_gp = block_diag(params["wgp"]).astype(jnp.bfloat16)                 # (L, NT, NT)
    b_gp = jnp.tile(params["bgp"], (1, 1, N))                             # (L, 1, NT) f32

    # gcn update_proj: wup (L, T, H*T), column index h*T + t  ->  per-head block-diags
    wup_h = params["wup"].reshape(L, T, H, T).transpose(0, 2, 1, 3)       # (L, H, To, Ti)
    wup_hT = jnp.swapaxes(wup_h, -1, -2)                                  # (L, H, Ti, To)
    w_up = jnp.einsum("ab,lhio->lhaibo", eyeN, wup_hT).reshape(
        L, H, NT, NT).astype(jnp.bfloat16)                                # (L, H, NT, NT)
    b_up = jnp.tile(params["bup"], (1, 1, N))                             # (L, 1, NT) f32

    # input-independent adjacency (hoisted out of the kernel): softmax(n1 @ n2^T - 1e9*I)
    logits = jnp.einsum("lhof,lhif->lhoi", params["n1"], params["n2"])    # (L, H, C, C) f32
    logits = logits - 1e9 * jnp.eye(C, dtype=jnp.float32)
    adj = jax.nn.softmax(logits, axis=-1)
    # expand to the per-grid-step row layout: rows/cols ordered (batch-in-block, channel)
    eyeB = jnp.eye(BBLK, dtype=jnp.float32)
    a_stack = jnp.einsum("pq,lhoi->lhpoqi", eyeB, adj).reshape(
        L, H * BBLK * C, BBLK * C).astype(jnp.bfloat16)                   # (L, H*RB, RB)

    return w_vg, b_vg, a_stack, w_gp, b_gp, w_up, b_up


@jax.jit
def res_projection_forward(x, params):
    B, C, N, T = x.shape
    NT = N * T
    L = params["wu"].shape[0]
    H = params["n1"].shape[1]

    BBLK = _pick_bblk(B, C)
    RB = BBLK * C
    nblocks = B // BBLK

    w_vg, b_vg, a_stack, w_gp, b_gp, w_up, b_up = _prep_params(params, N, BBLK)
    x_rows = x.reshape(B * C, NT)                 # lane-dense: last dim = N*T

    def full(shape):
        return pl.BlockSpec(shape, lambda i, s=shape: (0,) * len(s))

    out = pl.pallas_call(
        _res_projection_kernel,
        out_shape=jax.ShapeDtypeStruct((B * C, NT), x.dtype),
        grid=(nblocks,),
        in_specs=[
            pl.BlockSpec((RB, NT), lambda i: (i, 0)),   # x rows for this batch block
            full((L, H * RB, RB)),                      # stacked channel-mix (bf16)
            full((L, NT, 2 * NT)),                      # fused value|gate weight (bf16)
            full((L, 1, 2 * NT)),                       # fused value|gate bias   (f32)
            full((L, NT, NT)),                          # gate_proj block-diag    (bf16)
            full((L, 1, NT)),                           # gate_proj bias          (f32)
            full((L, H, NT, NT)),                       # update_proj per-head BD (bf16)
            full((L, 1, NT)),                           # update_proj bias        (f32)
        ],
        out_specs=pl.BlockSpec((RB, NT), lambda i: (i, 0)),
        compiler_params=pltpu.CompilerParams(dimension_semantics=("parallel",)),
    )(x_rows, a_stack, w_vg, b_vg, w_gp, b_gp, w_up, b_up)

    return out.reshape(B, C, N, T)


# --------------------------------------------------------------------------------------
# Pure-JAX reference mirroring the PyTorch forward (same bf16-at-matmul precision)
# --------------------------------------------------------------------------------------
def res_projection_reference(x, params):
    B, C, N, T = x.shape
    L = params["wu"].shape[0]
    f32, bf16 = jnp.float32, jnp.bfloat16
    eye = jnp.eye(C, dtype=f32)

    def linear(a, w, b):  # torch nn.Linear: a @ w.T + b (bf16 operands, f32 accumulate)
        y = jnp.einsum("...i,oi->...o", a.astype(bf16), w.astype(bf16),
                       preferred_element_type=f32)
        return y + b

    for l in range(L):
        res = x
        # gated_mlp + F.tanh
        value = linear(x, params["wu"][l], params["bu"][l])
        gate = jax.nn.sigmoid(linear(x, params["wg"][l], params["bg"][l]))
        x = jnp.tanh(gate * value + (1.0 - gate) * x)
        # gated_gcn
        logits = jnp.einsum("hof,hif->hoi", params["n1"][l], params["n2"][l])  # f32
        logits = logits - 1e9 * eye[None]
        adj = jax.nn.softmax(logits, axis=-1)
        g = jnp.einsum("hoi,bins->bhons", adj.astype(bf16), x.astype(bf16),
                       preferred_element_type=f32)
        g = jnp.transpose(g, (0, 2, 3, 1, 4)).reshape(B, C, N, -1)
        g = linear(g, params["wup"][l], params["bup"][l])
        gate2 = jax.nn.sigmoid(linear(x, params["wgp"][l], params["bgp"][l]))
        x = res + jnp.tanh(gate2 * g + (1.0 - gate2) * x)
    return x


# --------------------------------------------------------------------------------------
if __name__ == "__main__":
    # small shapes consistent with the module: seq_in == seq_out (residual adds)
    B, C, N, T = 2, 4, 8, 16          # batch, channels, nodes, seq  (N*T = 128 lanes)
    L, H, hid = 4, 3, 10              # layers, adj_heads, hid_dim

    key = jax.random.PRNGKey(0)
    keys = jax.random.split(key, 11)
    s = 1.0 / np.sqrt(T)
    su = 1.0 / np.sqrt(H * T)
    params = {
        "wu":  jax.random.normal(keys[0], (L, T, T), jnp.float32) * s,
        "bu":  jax.random.normal(keys[1], (L, 1, T), jnp.float32) * s,
        "wg":  jax.random.normal(keys[2], (L, T, T), jnp.float32) * s,
        "bg":  jax.random.normal(keys[3], (L, 1, T), jnp.float32) * s,
        "n1":  jax.random.normal(keys[4], (L, H, C, hid), jnp.float32),
        "n2":  jax.random.normal(keys[5], (L, H, C, hid), jnp.float32),
        "wgp": jax.random.normal(keys[6], (L, T, T), jnp.float32) * s,
        "bgp": jax.random.normal(keys[7], (L, 1, T), jnp.float32) * s,
        "wup": jax.random.normal(keys[8], (L, T, H * T), jnp.float32) * su,
        "bup": jax.random.normal(keys[9], (L, 1, T), jnp.float32) * su,
    }
    x = jax.random.normal(keys[10], (B, C, N, T), jnp.float32)

    out = jax.block_until_ready(res_projection_forward(x, params))
    ref = jax.block_until_ready(res_projection_reference(x, params))

    assert out.shape == (B, C, N, T)
    np.testing.assert_allclose(np.asarray(out), np.asarray(ref), rtol=2e-3, atol=2e-3)
    print("KERNEL_OK")
</pallas_src>

<mosaic_0001>
module attributes {stable_mosaic.version = 11 : i64} {
  func.func @_res_projection_kernel(%arg0: i32, %arg1: memref<8x128xf32, #tpu.memory_space<vmem>>, %arg2: memref<4x24x8xbf16, #tpu.memory_space<vmem>>, %arg3: memref<4x128x256xbf16, #tpu.memory_space<vmem>>, %arg4: memref<4x1x256xf32, #tpu.memory_space<vmem>>, %arg5: memref<4x128x128xbf16, #tpu.memory_space<vmem>>, %arg6: memref<4x1x128xf32, #tpu.memory_space<vmem>>, %arg7: memref<4x3x128x128xbf16, #tpu.memory_space<vmem>>, %arg8: memref<4x1x128xf32, #tpu.memory_space<vmem>>, %arg9: memref<8x128xf32, #tpu.memory_space<vmem>>) attributes {dimension_semantics = [#tpu.dimension_semantics<parallel>], iteration_bounds = array<i64: 1>, scalar_prefetch = 0 : i64, scratch_operands = 0 : i64, tpu.core_type = #tpu.core_type<tc>, window_params = [{transform_indices = @transform_0, window_bounds = array<i64: 8, 128>}, {pipeline_mode = #tpu.pipeline_mode<synchronous>, transform_indices = @transform_1, window_bounds = array<i64: 4, 24, 8>}, {pipeline_mode = #tpu.pipeline_mode<synchronous>, transform_indices = @transform_2, window_bounds = array<i64: 4, 128, 256>}, {pipeline_mode = #tpu.pipeline_mode<synchronous>, transform_indices = @transform_3, window_bounds = array<i64: 4, 1, 256>}, {pipeline_mode = #tpu.pipeline_mode<synchronous>, transform_indices = @transform_4, window_bounds = array<i64: 4, 128, 128>}, {pipeline_mode = #tpu.pipeline_mode<synchronous>, transform_indices = @transform_5, window_bounds = array<i64: 4, 1, 128>}, {pipeline_mode = #tpu.pipeline_mode<synchronous>, transform_indices = @transform_6, window_bounds = array<i64: 4, 3, 128, 128>}, {pipeline_mode = #tpu.pipeline_mode<synchronous>, transform_indices = @transform_7, window_bounds = array<i64: 4, 1, 128>}, {transform_indices = @transform_8, window_bounds = array<i64: 8, 128>}]} {
    %c0 = arith.constant 0 : index
    %c0_0 = arith.constant 0 : index
    %0 = vector.load %arg1[%c0, %c0_0] : memref<8x128xf32, #tpu.memory_space<vmem>>, vector<8x128xf32>
    %1 = arith.truncf %0 : vector<8x128xf32> to vector<8x128xbf16>
    %c0_1 = arith.constant 0 : index
    %c0_2 = arith.constant 0 : index
    %c0_3 = arith.constant 0 : index
    %2 = vector.load %arg3[%c0_1, %c0_2, %c0_3] : memref<4x128x256xbf16, #tpu.memory_space<vmem>>, vector<1x128x256xbf16>
    %3 = vector.shape_cast %2 : vector<1x128x256xbf16> to vector<128x256xbf16>
    %cst = arith.constant dense<0.000000e+00> : vector<8x256xf32>
    %4 = tpu.matmul %1, %3, %cst {dimension_numbers = #tpu.dot_dimension_numbers<[1], [0], [0], [1], [0, 0, 1, 1], [], []>} : vector<8x128xbf16>, vector<128x256xbf16>, vector<8x256xf32> -> vector<8x256xf32>
    %c0_4 = arith.constant 0 : index
    %c0_5 = arith.constant 0 : index
    %c0_6 = arith.constant 0 : index
    %5 = vector.load %arg4[%c0_4, %c0_5, %c0_6] : memref<4x1x256xf32, #tpu.memory_space<vmem>>, vector<1x1x256xf32>
    %6 = vector.shape_cast %5 : vector<1x1x256xf32> to vector<1x256xf32>
    %7 = vector.broadcast %6 : vector<1x256xf32> to vector<8x256xf32>
    %8 = arith.addf %4, %7 : vector<8x256xf32>
    %9 = vector.extract_strided_slice %8 {offsets = [0, 0], sizes = [8, 128], strides = [1, 1]} : vector<8x256xf32> to vector<8x128xf32>
    %10 = vector.extract_strided_slice %8 {offsets = [0, 128], sizes = [8, 128], strides = [1, 1]} : vector<8x256xf32> to vector<8x128xf32>
    %11 = arith.negf %10 : vector<8x128xf32>
    %12 = math.exp %11 : vector<8x128xf32>
    %cst_7 = arith.constant 1.000000e+00 : f32
    %13 = vector.broadcast %cst_7 : f32 to vector<8x128xf32>
    %14 = arith.addf %13, %12 : vector<8x128xf32>
    %15 = arith.divf %13, %14 : vector<8x128xf32>
    %16 = arith.mulf %15, %9 : vector<8x128xf32>
    %cst_8 = arith.constant 1.000000e+00 : f32
    %17 = vector.broadcast %cst_8 : f32 to vector<8x128xf32>
    %18 = arith.subf %17, %15 : vector<8x128xf32>
    %19 = arith.mulf %18, %0 : vector<8x128xf32>
    %20 = arith.addf %16, %19 : vector<8x128xf32>
    %21 = math.tanh %20 : vector<8x128xf32>
    %22 = arith.truncf %21 : vector<8x128xf32> to vector<8x128xbf16>
    %c0_9 = arith.constant 0 : index
    %c0_10 = arith.constant 0 : index
    %c0_11 = arith.constant 0 : index
    %23 = vector.load %arg2[%c0_9, %c0_10, %c0_11] : memref<4x24x8xbf16, #tpu.memory_space<vmem>>, vector<1x24x8xbf16>
    %24 = vector.shape_cast %23 : vector<1x24x8xbf16> to vector<24x8xbf16>
    %cst_12 = arith.constant dense<0.000000e+00> : vector<24x128xf32>
    %25 = tpu.matmul %24, %22, %cst_12 {dimension_numbers = #tpu.dot_dimension_numbers<[1], [0], [0], [1], [0, 0, 1, 1], [], []>} : vector<24x8xbf16>, vector<8x128xbf16>, vector<24x128xf32> -> vector<24x128xf32>
    %26 = arith.truncf %25 : vector<24x128xf32> to vector<24x128xbf16>
    %27 = vector.extract_strided_slice %26 {offsets = [0, 0], sizes = [8, 128], strides = [1, 1]} : vector<24x128xbf16> to vector<8x128xbf16>
    %c0_13 = arith.constant 0 : index
    %c0_14 = arith.constant 0 : index
    %c0_15 = arith.constant 0 : index
    %c0_16 = arith.constant 0 : index
    %28 = vector.load %arg7[%c0_13, %c0_14, %c0_15, %c0_16] : memref<4x3x128x128xbf16, #tpu.memory_space<vmem>>, vector<1x1x128x128xbf16>
    %29 = vector.shape_cast %28 : vector<1x1x128x128xbf16> to vector<128x128xbf16>
    %cst_17 = arith.constant dense<0.000000e+00> : vector<8x128xf32>
    %30 = tpu.matmul %27, %29, %cst_17 {dimension_numbers = #tpu.dot_dimension_numbers<[1], [0], [0], [1], [0, 0, 1, 1], [], []>} : vector<8x128xbf16>, vector<128x128xbf16>, vector<8x128xf32> -> vector<8x128xf32>
    %31 = vector.extract_strided_slice %26 {offsets = [8, 0], sizes = [8, 128], strides = [1, 1]} : vector<24x128xbf16> to vector<8x128xbf16>
    %c0_18 = arith.constant 0 : index
    %c1 = arith.constant 1 : index
    %c0_19 = arith.constant 0 : index
    %c0_20 = arith.constant 0 : index
    %32 = vector.load %arg7[%c0_18, %c1, %c0_19, %c0_20] : memref<4x3x128x128xbf16, #tpu.memory_space<vmem>>, vector<1x1x128x128xbf16>
    %33 = vector.shape_cast %32 : vector<1x1x128x128xbf16> to vector<128x128xbf16>
    %cst_21 = arith.constant dense<0.000000e+00> : vector<8x128xf32>
    %34 = tpu.matmul %31, %33, %cst_21 {dimension_numbers = #tpu.dot_dimension_numbers<[1], [0], [0], [1], [0, 0, 1, 1], [], []>} : vector<8x128xbf16>, vector<128x128xbf16>, vector<8x128xf32> -> vector<8x128xf32>
    %35 = arith.addf %30, %34 : vector<8x128xf32>
    %36 = vector.extract_strided_slice %26 {offsets = [16, 0], sizes = [8, 128], strides = [1, 1]} : vector<24x128xbf16> to vector<8x128xbf16>
    %c0_22 = arith.constant 0 : index
    %c2 = arith.constant 2 : index
    %c0_23 = arith.constant 0 : index
    %c0_24 = arith.constant 0 : index
    %37 = vector.load %arg7[%c0_22, %c2, %c0_23, %c0_24] : memref<4x3x128x128xbf16, #tpu.memory_space<vmem>>, vector<1x1x128x128xbf16>
    %38 = vector.shape_cast %37 : vector<1x1x128x128xbf16> to vector<128x128xbf16>
    %cst_25 = arith.constant dense<0.000000e+00> : vector<8x128xf32>
    %39 = tpu.matmul %36, %38, %cst_25 {dimension_numbers = #tpu.dot_dimension_numbers<[1], [0], [0], [1], [0, 0, 1, 1], [], []>} : vector<8x128xbf16>, vector<128x128xbf16>, vector<8x128xf32> -> vector<8x128xf32>
    %40 = arith.addf %35, %39 : vector<8x128xf32>
    %c0_26 = arith.constant 0 : index
    %c0_27 = arith.constant 0 : index
    %c0_28 = arith.constant 0 : index
    %41 = vector.load %arg8[%c0_26, %c0_27, %c0_28] : memref<4x1x128xf32, #tpu.memory_space<vmem>>, vector<1x1x128xf32>
    %42 = vector.shape_cast %41 : vector<1x1x128xf32> to vector<1x128xf32>
    %43 = vector.broadcast %42 : vector<1x128xf32> to vector<8x128xf32>
    %44 = arith.addf %40, %43 : vector<8x128xf32>
    %c0_29 = arith.constant 0 : index
    %c0_30 = arith.constant 0 : index
    %c0_31 = arith.constant 0 : index
    %45 = vector.load %arg5[%c0_29, %c0_30, %c0_31] : memref<4x128x128xbf16, #tpu.memory_space<vmem>>, vector<1x128x128xbf16>
    %46 = vector.shape_cast %45 : vector<1x128x128xbf16> to vector<128x128xbf16>
    %cst_32 = arith.constant dense<0.000000e+00> : vector<8x128xf32>
    %47 = tpu.matmul %22, %46, %cst_32 {dimension_numbers = #tpu.dot_dimension_numbers<[1], [0], [0], [1], [0, 0, 1, 1], [], []>} : vector<8x128xbf16>, vector<128x128xbf16>, vector<8x128xf32> -> vector<8x128xf32>
    %c0_33 = arith.constant 0 : index
    %c0_34 = arith.constant 0 : index
    %c0_35 = arith.constant 0 : index
    %48 = vector.load %arg6[%c0_33, %c0_34, %c0_35] : memref<4x1x128xf32, #tpu.memory_space<vmem>>, vector<1x1x128xf32>
    %49 = vector.shape_cast %48 : vector<1x1x128xf32> to vector<1x128xf32>
    %50 = vector.broadcast %49 : vector<1x128xf32> to vector<8x128xf32>
    %51 = arith.addf %47, %50 : vector<8x128xf32>
    %52 = arith.negf %51 : vector<8x128xf32>
    %53 = math.exp %52 : vector<8x128xf32>
    %cst_36 = arith.constant 1.000000e+00 : f32
    %54 = vector.broadcast %cst_36 : f32 to vector<8x128xf32>
    %55 = arith.addf %54, %53 : vector<8x128xf32>
    %56 = arith.divf %54, %55 : vector<8x128xf32>
    %57 = arith.mulf %56, %44 : vector<8x128xf32>
    %cst_37 = arith.constant 1.000000e+00 : f32
    %58 = vector.broadcast %cst_37 : f32 to vector<8x128xf32>
    %59 = arith.subf %58, %56 : vector<8x128xf32>
    %60 = arith.mulf %59, %21 : vector<8x128xf32>
    %61 = arith.addf %57, %60 : vector<8x128xf32>
    %62 = math.tanh %61 : vector<8x128xf32>
    %63 = arith.addf %0, %62 : vector<8x128xf32>
    %64 = arith.truncf %63 : vector<8x128xf32> to vector<8x128xbf16>
    %c1_38 = arith.constant 1 : index
    %c0_39 = arith.constant 0 : index
    %c0_40 = arith.constant 0 : index
    %65 = vector.load %arg3[%c1_38, %c0_39, %c0_40] : memref<4x128x256xbf16, #tpu.memory_space<vmem>>, vector<1x128x256xbf16>
    %66 = vector.shape_cast %65 : vector<1x128x256xbf16> to vector<128x256xbf16>
    %cst_41 = arith.constant dense<0.000000e+00> : vector<8x256xf32>
    %67 = tpu.matmul %64, %66, %cst_41 {dimension_numbers = #tpu.dot_dimension_numbers<[1], [0], [0], [1], [0, 0, 1, 1], [], []>} : vector<8x128xbf16>, vector<128x256xbf16>, vector<8x256xf32> -> vector<8x256xf32>
    %c1_42 = arith.constant 1 : index
    %c0_43 = arith.constant 0 : index
    %c0_44 = arith.constant 0 : index
    %68 = vector.load %arg4[%c1_42, %c0_43, %c0_44] : memref<4x1x256xf32, #tpu.memory_space<vmem>>, vector<1x1x256xf32>
    %69 = vector.shape_cast %68 : vector<1x1x256xf32> to vector<1x256xf32>
    %70 = vector.broadcast %69 : vector<1x256xf32> to vector<8x256xf32>
    %71 = arith.addf %67, %70 : vector<8x256xf32>
    %72 = vector.extract_strided_slice %71 {offsets = [0, 0], sizes = [8, 128], strides = [1, 1]} : vector<8x256xf32> to vector<8x128xf32>
    %73 = vector.extract_strided_slice %71 {offsets = [0, 128], sizes = [8, 128], strides = [1, 1]} : vector<8x256xf32> to vector<8x128xf32>
    %74 = arith.negf %73 : vector<8x128xf32>
    %75 = math.exp %74 : vector<8x128xf32>
    %cst_45 = arith.constant 1.000000e+00 : f32
    %76 = vector.broadcast %cst_45 : f32 to vector<8x128xf32>
    %77 = arith.addf %76, %75 : vector<8x128xf32>
    %78 = arith.divf %76, %77 : vector<8x128xf32>
    %79 = arith.mulf %78, %72 : vector<8x128xf32>
    %cst_46 = arith.constant 1.000000e+00 : f32
    %80 = vector.broadcast %cst_46 : f32 to vector<8x128xf32>
    %81 = arith.subf %80, %78 : vector<8x128xf32>
    %82 = arith.mulf %81, %63 : vector<8x128xf32>
    %83 = arith.addf %79, %82 : vector<8x128xf32>
    %84 = math.tanh %83 : vector<8x128xf32>
    %85 = arith.truncf %84 : vector<8x128xf32> to vector<8x128xbf16>
    %c1_47 = arith.constant 1 : index
    %c0_48 = arith.constant 0 : index
    %c0_49 = arith.constant 0 : index
    %86 = vector.load %arg2[%c1_47, %c0_48, %c0_49] : memref<4x24x8xbf16, #tpu.memory_space<vmem>>, vector<1x24x8xbf16>
    %87 = vector.shape_cast %86 : vector<1x24x8xbf16> to vector<24x8xbf16>
    %cst_50 = arith.constant dense<0.000000e+00> : vector<24x128xf32>
    %88 = tpu.matmul %87, %85, %cst_50 {dimension_numbers = #tpu.dot_dimension_numbers<[1], [0], [0], [1], [0, 0, 1, 1], [], []>} : vector<24x8xbf16>, vector<8x128xbf16>, vector<24x128xf32> -> vector<24x128xf32>
    %89 = arith.truncf %88 : vector<24x128xf32> to vector<24x128xbf16>
    %90 = vector.extract_strided_slice %89 {offsets = [0, 0], sizes = [8, 128], strides = [1, 1]} : vector<24x128xbf16> to vector<8x128xbf16>
    %c1_51 = arith.constant 1 : index
    %c0_52 = arith.constant 0 : index
    %c0_53 = arith.constant 0 : index
    %c0_54 = arith.constant 0 : index
    %91 = vector.load %arg7[%c1_51, %c0_52, %c0_53, %c0_54] : memref<4x3x128x128xbf16, #tpu.memory_space<vmem>>, vector<1x1x128x128xbf16>
    %92 = vector.shape_cast %91 : vector<1x1x128x128xbf16> to vector<128x128xbf16>
    %cst_55 = arith.constant dense<0.000000e+00> : vector<8x128xf32>
    %93 = tpu.matmul %90, %92, %cst_55 {dimension_numbers = #tpu.dot_dimension_numbers<[1], [0], [0], [1], [0, 0, 1, 1], [], []>} : vector<8x128xbf16>, vector<128x128xbf16>, vector<8x128xf32> -> vector<8x128xf32>
    %94 = vector.extract_strided_slice %89 {offsets = [8, 0], sizes = [8, 128], strides = [1, 1]} : vector<24x128xbf16> to vector<8x128xbf16>
    %c1_56 = arith.constant 1 : index
    %c1_57 = arith.constant 1 : index
    %c0_58 = arith.constant 0 : index
    %c0_59 = arith.constant 0 : index
    %95 = vector.load %arg7[%c1_56, %c1_57, %c0_58, %c0_59] : memref<4x3x128x128xbf16, #tpu.memory_space<vmem>>, vector<1x1x128x128xbf16>
    %96 = vector.shape_cast %95 : vector<1x1x128x128xbf16> to vector<128x128xbf16>
    %cst_60 = arith.constant dense<0.000000e+00> : vector<8x128xf32>
    %97 = tpu.matmul %94, %96, %cst_60 {dimension_numbers = #tpu.dot_dimension_numbers<[1], [0], [0], [1], [0, 0, 1, 1], [], []>} : vector<8x128xbf16>, vector<128x128xbf16>, vector<8x128xf32> -> vector<8x128xf32>
    %98 = arith.addf %93, %97 : vector<8x128xf32>
    %99 = vector.extract_strided_slice %89 {offsets = [16, 0], sizes = [8, 128], strides = [1, 1]} : vector<24x128xbf16> to vector<8x128xbf16>
    %c1_61 = arith.constant 1 : index
    %c2_62 = arith.constant 2 : index
    %c0_63 = arith.constant 0 : index
    %c0_64 = arith.constant 0 : index
    %100 = vector.load %arg7[%c1_61, %c2_62, %c0_63, %c0_64] : memref<4x3x128x128xbf16, #tpu.memory_space<vmem>>, vector<1x1x128x128xbf16>
    %101 = vector.shape_cast %100 : vector<1x1x128x128xbf16> to vector<128x128xbf16>
    %cst_65 = arith.constant dense<0.000000e+00> : vector<8x128xf32>
    %102 = tpu.matmul %99, %101, %cst_65 {dimension_numbers = #tpu.dot_dimension_numbers<[1], [0], [0], [1], [0, 0, 1, 1], [], []>} : vector<8x128xbf16>, vector<128x128xbf16>, vector<8x128xf32> -> vector<8x128xf32>
    %103 = arith.addf %98, %102 : vector<8x128xf32>
    %c1_66 = arith.constant 1 : index
    %c0_67 = arith.constant 0 : index
    %c0_68 = arith.constant 0 : index
    %104 = vector.load %arg8[%c1_66, %c0_67, %c0_68] : memref<4x1x128xf32, #tpu.memory_space<vmem>>, vector<1x1x128xf32>
    %105 = vector.shape_cast %104 : vector<1x1x128xf32> to vector<1x128xf32>
    %106 = vector.broadcast %105 : vector<1x128xf32> to vector<8x128xf32>
    %107 = arith.addf %103, %106 : vector<8x128xf32>
    %c1_69 = arith.constant 1 : index
    %c0_70 = arith.constant 0 : index
    %c0_71 = arith.constant 0 : index
    %108 = vector.load %arg5[%c1_69, %c0_70, %c0_71] : memref<4x128x128xbf16, #tpu.memory_space<vmem>>, vector<1x128x128xbf16>
    %109 = vector.shape_cast %108 : vector<1x128x128xbf16> to vector<128x128xbf16>
    %cst_72 = arith.constant dense<0.000000e+00> : vector<8x128xf32>
    %110 = tpu.matmul %85, %109, %cst_72 {dimension_numbers = #tpu.dot_dimension_numbers<[1], [0], [0], [1], [0, 0, 1, 1], [], []>} : vector<8x128xbf16>, vector<128x128xbf16>, vector<8x128xf32> -> vector<8x128xf32>
    %c1_73 = arith.constant 1 : index
    %c0_74 = arith.constant 0 : index
    %c0_75 = arith.constant 0 : index
    %111 = vector.load %arg6[%c1_73, %c0_74, %c0_75] : memref<4x1x128xf32, #tpu.memory_space<vmem>>, vector<1x1x128xf32>
    %112 = vector.shape_cast %111 : vector<1x1x128xf32> to vector<1x128xf32>
    %113 = vector.broadcast %112 : vector<1x128xf32> to vector<8x128xf32>
    %114 = arith.addf %110, %113 : vector<8x128xf32>
    %115 = arith.negf %114 : vector<8x128xf32>
    %116 = math.exp %115 : vector<8x128xf32>
    %cst_76 = arith.constant 1.000000e+00 : f32
    %117 = vector.broadcast %cst_76 : f32 to vector<8x128xf32>
    %118 = arith.addf %117, %116 : vector<8x128xf32>
    %119 = arith.divf %117, %118 : vector<8x128xf32>
    %120 = arith.mulf %119, %107 : vector<8x128xf32>
    %cst_77 = arith.constant 1.000000e+00 : f32
    %121 = vector.broadcast %cst_77 : f32 to vector<8x128xf32>
    %122 = arith.subf %121, %119 : vector<8x128xf32>
    %123 = arith.mulf %122, %84 : vector<8x128xf32>
    %124 = arith.addf %120, %123 : vector<8x128xf32>
    %125 = math.tanh %124 : vector<8x128xf32>
    %126 = arith.addf %63, %125 : vector<8x128xf32>
    %127 = arith.truncf %126 : vector<8x128xf32> to vector<8x128xbf16>
    %c2_78 = arith.constant 2 : index
    %c0_79 = arith.constant 0 : index
    %c0_80 = arith.constant 0 : index
    %128 = vector.load %arg3[%c2_78, %c0_79, %c0_80] : memref<4x128x256xbf16, #tpu.memory_space<vmem>>, vector<1x128x256xbf16>
    %129 = vector.shape_cast %128 : vector<1x128x256xbf16> to vector<128x256xbf16>
    %cst_81 = arith.constant dense<0.000000e+00> : vector<8x256xf32>
    %130 = tpu.matmul %127, %129, %cst_81 {dimension_numbers = #tpu.dot_dimension_numbers<[1], [0], [0], [1], [0, 0, 1, 1], [], []>} : vector<8x128xbf16>, vector<128x256xbf16>, vector<8x256xf32> -> vector<8x256xf32>
    %c2_82 = arith.constant 2 : index
    %c0_83 = arith.constant 0 : index
    %c0_84 = arith.constant 0 : index
    %131 = vector.load %arg4[%c2_82, %c0_83, %c0_84] : memref<4x1x256xf32, #tpu.memory_space<vmem>>, vector<1x1x256xf32>
    %132 = vector.shape_cast %131 : vector<1x1x256xf32> to vector<1x256xf32>
    %133 = vector.broadcast %132 : vector<1x256xf32> to vector<8x256xf32>
    %134 = arith.addf %130, %133 : vector<8x256xf32>
    %135 = vector.extract_strided_slice %134 {offsets = [0, 0], sizes = [8, 128], strides = [1, 1]} : vector<8x256xf32> to vector<8x128xf32>
    %136 = vector.extract_strided_slice %134 {offsets = [0, 128], sizes = [8, 128], strides = [1, 1]} : vector<8x256xf32> to vector<8x128xf32>
    %137 = arith.negf %136 : vector<8x128xf32>
    %138 = math.exp %137 : vector<8x128xf32>
    %cst_85 = arith.constant 1.000000e+00 : f32
    %139 = vector.broadcast %cst_85 : f32 to vector<8x128xf32>
    %140 = arith.addf %139, %138 : vector<8x128xf32>
    %141 = arith.divf %139, %140 : vector<8x128xf32>
    %142 = arith.mulf %141, %135 : vector<8x128xf32>
    %cst_86 = arith.constant 1.000000e+00 : f32
    %143 = vector.broadcast %cst_86 : f32 to vector<8x128xf32>
    %144 = arith.subf %143, %141 : vector<8x128xf32>
    %145 = arith.mulf %144, %126 : vector<8x128xf32>
    %146 = arith.addf %142, %145 : vector<8x128xf32>
    %147 = math.tanh %146 : vector<8x128xf32>
    %148 = arith.truncf %147 : vector<8x128xf32> to vector<8x128xbf16>
    %c2_87 = arith.constant 2 : index
    %c0_88 = arith.constant 0 : index
    %c0_89 = arith.constant 0 : index
    %149 = vector.load %arg2[%c2_87, %c0_88, %c0_89] : memref<4x24x8xbf16, #tpu.memory_space<vmem>>, vector<1x24x8xbf16>
    %150 = vector.shape_cast %149 : vector<1x24x8xbf16> to vector<24x8xbf16>
    %cst_90 = arith.constant dense<0.000000e+00> : vector<24x128xf32>
    %151 = tpu.matmul %150, %148, %cst_90 {dimension_numbers = #tpu.dot_dimension_numbers<[1], [0], [0], [1], [0, 0, 1, 1], [], []>} : vector<24x8xbf16>, vector<8x128xbf16>, vector<24x128xf32> -> vector<24x128xf32>
    %152 = arith.truncf %151 : vector<24x128xf32> to vector<24x128xbf16>
    %153 = vector.extract_strided_slice %152 {offsets = [0, 0], sizes = [8, 128], strides = [1, 1]} : vector<24x128xbf16> to vector<8x128xbf16>
    %c2_91 = arith.constant 2 : index
    %c0_92 = arith.constant 0 : index
    %c0_93 = arith.constant 0 : index
    %c0_94 = arith.constant 0 : index
    %154 = vector.load %arg7[%c2_91, %c0_92, %c0_93, %c0_94] : memref<4x3x128x128xbf16, #tpu.memory_space<vmem>>, vector<1x1x128x128xbf16>
    %155 = vector.shape_cast %154 : vector<1x1x128x128xbf16> to vector<128x128xbf16>
    %cst_95 = arith.constant dense<0.000000e+00> : vector<8x128xf32>
    %156 = tpu.matmul %153, %155, %cst_95 {dimension_numbers = #tpu.dot_dimension_numbers<[1], [0], [0], [1], [0, 0, 1, 1], [], []>} : vector<8x128xbf16>, vector<128x128xbf16>, vector<8x128xf32> -> vector<8x128xf32>
    %157 = vector.extract_strided_slice %152 {offsets = [8, 0], sizes = [8, 128], strides = [1, 1]} : vector<24x128xbf16> to vector<8x128xbf16>
    %c2_96 = arith.constant 2 : index
    %c1_97 = arith.constant 1 : index
    %c0_98 = arith.constant 0 : index
    %c0_99 = arith.constant 0 : index
    %158 = vector.load %arg7[%c2_96, %c1_97, %c0_98, %c0_99] : memref<4x3x128x128xbf16, #tpu.memory_space<vmem>>, vector<1x1x128x128xbf16>
    %159 = vector.shape_cast %158 : vector<1x1x128x128xbf16> to vector<128x128xbf16>
    %cst_100 = arith.constant dense<0.000000e+00> : vector<8x128xf32>
    %160 = tpu.matmul %157, %159, %cst_100 {dimension_numbers = #tpu.dot_dimension_numbers<[1], [0], [0], [1], [0, 0, 1, 1], [], []>} : vector<8x128xbf16>, vector<128x128xbf16>, vector<8x128xf32> -> vector<8x128xf32>
    %161 = arith.addf %156, %160 : vector<8x128xf32>
    %162 = vector.extract_strided_slice %152 {offsets = [16, 0], sizes = [8, 128], strides = [1, 1]} : vector<24x128xbf16> to vector<8x128xbf16>
    %c2_101 = arith.constant 2 : index
    %c2_102 = arith.constant 2 : index
    %c0_103 = arith.constant 0 : index
    %c0_104 = arith.constant 0 : index
    %163 = vector.load %arg7[%c2_101, %c2_102, %c0_103, %c0_104] : memref<4x3x128x128xbf16, #tpu.memory_space<vmem>>, vector<1x1x128x128xbf16>
    %164 = vector.shape_cast %163 : vector<1x1x128x128xbf16> to vector<128x128xbf16>
    %cst_105 = arith.constant dense<0.000000e+00> : vector<8x128xf32>
    %165 = tpu.matmul %162, %164, %cst_105 {dimension_numbers = #tpu.dot_dimension_numbers<[1], [0], [0], [1], [0, 0, 1, 1], [], []>} : vector<8x128xbf16>, vector<128x128xbf16>, vector<8x128xf32> -> vector<8x128xf32>
    %166 = arith.addf %161, %165 : vector<8x128xf32>
    %c2_106 = arith.constant 2 : index
    %c0_107 = arith.constant 0 : index
    %c0_108 = arith.constant 0 : index
    %167 = vector.load %arg8[%c2_106, %c0_107, %c0_108] : memref<4x1x128xf32, #tpu.memory_space<vmem>>, vector<1x1x128xf32>
    %168 = vector.shape_cast %167 : vector<1x1x128xf32> to vector<1x128xf32>
    %169 = vector.broadcast %168 : vector<1x128xf32> to vector<8x128xf32>
    %170 = arith.addf %166, %169 : vector<8x128xf32>
    %c2_109 = arith.constant 2 : index
    %c0_110 = arith.constant 0 : index
    %c0_111 = arith.constant 0 : index
    %171 = vector.load %arg5[%c2_109, %c0_110, %c0_111] : memref<4x128x128xbf16, #tpu.memory_space<vmem>>, vector<1x128x128xbf16>
    %172 = vector.shape_cast %171 : vector<1x128x128xbf16> to vector<128x128xbf16>
    %cst_112 = arith.constant dense<0.000000e+00> : vector<8x128xf32>
    %173 = tpu.matmul %148, %172, %cst_112 {dimension_numbers = #tpu.dot_dimension_numbers<[1], [0], [0], [1], [0, 0, 1, 1], [], []>} : vector<8x128xbf16>, vector<128x128xbf16>, vector<8x128xf32> -> vector<8x128xf32>
    %c2_113 = arith.constant 2 : index
    %c0_114 = arith.constant 0 : index
    %c0_115 = arith.constant 0 : index
    %174 = vector.load %arg6[%c2_113, %c0_114, %c0_115] : memref<4x1x128xf32, #tpu.memory_space<vmem>>, vector<1x1x128xf32>
    %175 = vector.shape_cast %174 : vector<1x1x128xf32> to vector<1x128xf32>
    %176 = vector.broadcast %175 : vector<1x128xf32> to vector<8x128xf32>
    %177 = arith.addf %173, %176 : vector<8x128xf32>
    %178 = arith.negf %177 : vector<8x128xf32>
    %179 = math.exp %178 : vector<8x128xf32>
    %cst_116 = arith.constant 1.000000e+00 : f32
    %180 = vector.broadcast %cst_116 : f32 to vector<8x128xf32>
    %181 = arith.addf %180, %179 : vector<8x128xf32>
    %182 = arith.divf %180, %181 : vector<8x128xf32>
    %183 = arith.mulf %182, %170 : vector<8x128xf32>
    %cst_117 = arith.constant 1.000000e+00 : f32
    %184 = vector.broadcast %cst_117 : f32 to vector<8x128xf32>
    %185 = arith.subf %184, %182 : vector<8x128xf32>
    %186 = arith.mulf %185, %147 : vector<8x128xf32>
    %187 = arith.addf %183, %186 : vector<8x128xf32>
    %188 = math.tanh %187 : vector<8x128xf32>
    %189 = arith.addf %126, %188 : vector<8x128xf32>
    %190 = arith.truncf %189 : vector<8x128xf32> to vector<8x128xbf16>
    %c3 = arith.constant 3 : index
    %c0_118 = arith.constant 0 : index
    %c0_119 = arith.constant 0 : index
    %191 = vector.load %arg3[%c3, %c0_118, %c0_119] : memref<4x128x256xbf16, #tpu.memory_space<vmem>>, vector<1x128x256xbf16>
    %192 = vector.shape_cast %191 : vector<1x128x256xbf16> to vector<128x256xbf16>
    %cst_120 = arith.constant dense<0.000000e+00> : vector<8x256xf32>
    %193 = tpu.matmul %190, %192, %cst_120 {dimension_numbers = #tpu.dot_dimension_numbers<[1], [0], [0], [1], [0, 0, 1, 1], [], []>} : vector<8x128xbf16>, vector<128x256xbf16>, vector<8x256xf32> -> vector<8x256xf32>
    %c3_121 = arith.constant 3 : index
    %c0_122 = arith.constant 0 : index
    %c0_123 = arith.constant 0 : index
    %194 = vector.load %arg4[%c3_121, %c0_122, %c0_123] : memref<4x1x256xf32, #tpu.memory_space<vmem>>, vector<1x1x256xf32>
    %195 = vector.shape_cast %194 : vector<1x1x256xf32> to vector<1x256xf32>
    %196 = vector.broadcast %195 : vector<1x256xf32> to vector<8x256xf32>
    %197 = arith.addf %193, %196 : vector<8x256xf32>
    %198 = vector.extract_strided_slice %197 {offsets = [0, 0], sizes = [8, 128], strides = [1, 1]} : vector<8x256xf32> to vector<8x128xf32>
    %199 = vector.extract_strided_slice %197 {offsets = [0, 128], sizes = [8, 128], strides = [1, 1]} : vector<8x256xf32> to vector<8x128xf32>
    %200 = arith.negf %199 : vector<8x128xf32>
    %201 = math.exp %200 : vector<8x128xf32>
    %cst_124 = arith.constant 1.000000e+00 : f32
    %202 = vector.broadcast %cst_124 : f32 to vector<8x128xf32>
    %203 = arith.addf %202, %201 : vector<8x128xf32>
    %204 = arith.divf %202, %203 : vector<8x128xf32>
    %205 = arith.mulf %204, %198 : vector<8x128xf32>
    %cst_125 = arith.constant 1.000000e+00 : f32
    %206 = vector.broadcast %cst_125 : f32 to vector<8x128xf32>
    %207 = arith.subf %206, %204 : vector<8x128xf32>
    %208 = arith.mulf %207, %189 : vector<8x128xf32>
    %209 = arith.addf %205, %208 : vector<8x128xf32>
    %210 = math.tanh %209 : vector<8x128xf32>
    %211 = arith.truncf %210 : vector<8x128xf32> to vector<8x128xbf16>
    %c3_126 = arith.constant 3 : index
    %c0_127 = arith.constant 0 : index
    %c0_128 = arith.constant 0 : index
    %212 = vector.load %arg2[%c3_126, %c0_127, %c0_128] : memref<4x24x8xbf16, #tpu.memory_space<vmem>>, vector<1x24x8xbf16>
    %213 = vector.shape_cast %212 : vector<1x24x8xbf16> to vector<24x8xbf16>
    %cst_129 = arith.constant dense<0.000000e+00> : vector<24x128xf32>
    %214 = tpu.matmul %213, %211, %cst_129 {dimension_numbers = #tpu.dot_dimension_numbers<[1], [0], [0], [1], [0, 0, 1, 1], [], []>} : vector<24x8xbf16>, vector<8x128xbf16>, vector<24x128xf32> -> vector<24x128xf32>
    %215 = arith.truncf %214 : vector<24x128xf32> to vector<24x128xbf16>
    %216 = vector.extract_strided_slice %215 {offsets = [0, 0], sizes = [8, 128], strides = [1, 1]} : vector<24x128xbf16> to vector<8x128xbf16>
    %c3_130 = arith.constant 3 : index
    %c0_131 = arith.constant 0 : index
    %c0_132 = arith.constant 0 : index
    %c0_133 = arith.constant 0 : index
    %217 = vector.load %arg7[%c3_130, %c0_131, %c0_132, %c0_133] : memref<4x3x128x128xbf16, #tpu.memory_space<vmem>>, vector<1x1x128x128xbf16>
    %218 = vector.shape_cast %217 : vector<1x1x128x128xbf16> to vector<128x128xbf16>
    %cst_134 = arith.constant dense<0.000000e+00> : vector<8x128xf32>
    %219 = tpu.matmul %216, %218, %cst_134 {dimension_numbers = #tpu.dot_dimension_numbers<[1], [0], [0], [1], [0, 0, 1, 1], [], []>} : vector<8x128xbf16>, vector<128x128xbf16>, vector<8x128xf32> -> vector<8x128xf32>
    %220 = vector.extract_strided_slice %215 {offsets = [8, 0], sizes = [8, 128], strides = [1, 1]} : vector<24x128xbf16> to vector<8x128xbf16>
    %c3_135 = arith.constant 3 : index
    %c1_136 = arith.constant 1 : index
    %c0_137 = arith.constant 0 : index
    %c0_138 = arith.constant 0 : index
    %221 = vector.load %arg7[%c3_135, %c1_136, %c0_137, %c0_138] : memref<4x3x128x128xbf16, #tpu.memory_space<vmem>>, vector<1x1x128x128xbf16>
    %222 = vector.shape_cast %221 : vector<1x1x128x128xbf16> to vector<128x128xbf16>
    %cst_139 = arith.constant dense<0.000000e+00> : vector<8x128xf32>
    %223 = tpu.matmul %220, %222, %cst_139 {dimension_numbers = #tpu.dot_dimension_numbers<[1], [0], [0], [1], [0, 0, 1, 1], [], []>} : vector<8x128xbf16>, vector<128x128xbf16>, vector<8x128xf32> -> vector<8x128xf32>
    %224 = arith.addf %219, %223 : vector<8x128xf32>
    %225 = vector.extract_strided_slice %215 {offsets = [16, 0], sizes = [8, 128], strides = [1, 1]} : vector<24x128xbf16> to vector<8x128xbf16>
    %c3_140 = arith.constant 3 : index
    %c2_141 = arith.constant 2 : index
    %c0_142 = arith.constant 0 : index
    %c0_143 = arith.constant 0 : index
    %226 = vector.load %arg7[%c3_140, %c2_141, %c0_142, %c0_143] : memref<4x3x128x128xbf16, #tpu.memory_space<vmem>>, vector<1x1x128x128xbf16>
    %227 = vector.shape_cast %226 : vector<1x1x128x128xbf16> to vector<128x128xbf16>
    %cst_144 = arith.constant dense<0.000000e+00> : vector<8x128xf32>
    %228 = tpu.matmul %225, %227, %cst_144 {dimension_numbers = #tpu.dot_dimension_numbers<[1], [0], [0], [1], [0, 0, 1, 1], [], []>} : vector<8x128xbf16>, vector<128x128xbf16>, vector<8x128xf32> -> vector<8x128xf32>
    %229 = arith.addf %224, %228 : vector<8x128xf32>
    %c3_145 = arith.constant 3 : index
    %c0_146 = arith.constant 0 : index
    %c0_147 = arith.constant 0 : index
    %230 = vector.load %arg8[%c3_145, %c0_146, %c0_147] : memref<4x1x128xf32, #tpu.memory_space<vmem>>, vector<1x1x128xf32>
    %231 = vector.shape_cast %230 : vector<1x1x128xf32> to vector<1x128xf32>
    %232 = vector.broadcast %231 : vector<1x128xf32> to vector<8x128xf32>
    %233 = arith.addf %229, %232 : vector<8x128xf32>
    %c3_148 = arith.constant 3 : index
    %c0_149 = arith.constant 0 : index
    %c0_150 = arith.constant 0 : index
    %234 = vector.load %arg5[%c3_148, %c0_149, %c0_150] : memref<4x128x128xbf16, #tpu.memory_space<vmem>>, vector<1x128x128xbf16>
    %235 = vector.shape_cast %234 : vector<1x128x128xbf16> to vector<128x128xbf16>
    %cst_151 = arith.constant dense<0.000000e+00> : vector<8x128xf32>
    %236 = tpu.matmul %211, %235, %cst_151 {dimension_numbers = #tpu.dot_dimension_numbers<[1], [0], [0], [1], [0, 0, 1, 1], [], []>} : vector<8x128xbf16>, vector<128x128xbf16>, vector<8x128xf32> -> vector<8x128xf32>
    %c3_152 = arith.constant 3 : index
    %c0_153 = arith.constant 0 : index
    %c0_154 = arith.constant 0 : index
    %237 = vector.load %arg6[%c3_152, %c0_153, %c0_154] : memref<4x1x128xf32, #tpu.memory_space<vmem>>, vector<1x1x128xf32>
    %238 = vector.shape_cast %237 : vector<1x1x128xf32> to vector<1x128xf32>
    %239 = vector.broadcast %238 : vector<1x128xf32> to vector<8x128xf32>
    %240 = arith.addf %236, %239 : vector<8x128xf32>
    %241 = arith.negf %240 : vector<8x128xf32>
    %242 = math.exp %241 : vector<8x128xf32>
    %cst_155 = arith.constant 1.000000e+00 : f32
    %243 = vector.broadcast %cst_155 : f32 to vector<8x128xf32>
    %244 = arith.addf %243, %242 : vector<8x128xf32>
    %245 = arith.divf %243, %244 : vector<8x128xf32>
    %246 = arith.mulf %245, %233 : vector<8x128xf32>
    %cst_156 = arith.constant 1.000000e+00 : f32
    %247 = vector.broadcast %cst_156 : f32 to vector<8x128xf32>
    %248 = arith.subf %247, %245 : vector<8x128xf32>
    %249 = arith.mulf %248, %210 : vector<8x128xf32>
    %250 = arith.addf %246, %249 : vector<8x128xf32>
    %251 = math.tanh %250 : vector<8x128xf32>
    %252 = arith.addf %189, %251 : vector<8x128xf32>
    %c0_157 = arith.constant 0 : index
    %c0_158 = arith.constant 0 : index
    %253 = vector.load %arg9[%c0_157, %c0_158] : memref<8x128xf32, #tpu.memory_space<vmem>>, vector<8x128xf32>
    tpu.vector_store %arg9[%c0_157, %c0_158], %252 {strides = array<i32>} : memref<8x128xf32, #tpu.memory_space<vmem>>, vector<8x128xf32>,
    return
  }
  func.func @transform_0(%arg0: i32) -> (i32, i32) {
    %c0_i32 = arith.constant 0 : i32
    %c0_i32_0 = arith.constant 0 : i32
    return %arg0, %c0_i32 : i32, i32
  }
  func.func @transform_1(%arg0: i32) -> (i32, i32, i32) {
    %c0_i32 = arith.constant 0 : i32
    %c0_i32_0 = arith.constant 0 : i32
    %c0_i32_1 = arith.constant 0 : i32
    %c0_i32_2 = arith.constant 0 : i32
    return %c0_i32, %c0_i32_0, %c0_i32_1 : i32, i32, i32
  }
  func.func @transform_2(%arg0: i32) -> (i32, i32, i32) {
    %c0_i32 = arith.constant 0 : i32
    %c0_i32_0 = arith.constant 0 : i32
    %c0_i32_1 = arith.constant 0 : i32
    %c0_i32_2 = arith.constant 0 : i32
    return %c0_i32, %c0_i32_0, %c0_i32_1 : i32, i32, i32
  }
  func.func @transform_3(%arg0: i32) -> (i32, i32, i32) {
    %c0_i32 = arith.constant 0 : i32
    %c0_i32_0 = arith.constant 0 : i32
    %c0_i32_1 = arith.constant 0 : i32
    %c0_i32_2 = arith.constant 0 : i32
    return %c0_i32, %c0_i32_0, %c0_i32_1 : i32, i32, i32
  }
  func.func @transform_4(%arg0: i32) -> (i32, i32, i32) {
    %c0_i32 = arith.constant 0 : i32
    %c0_i32_0 = arith.constant 0 : i32
    %c0_i32_1 = arith.constant 0 : i32
    %c0_i32_2 = arith.constant 0 : i32
    return %c0_i32, %c0_i32_0, %c0_i32_1 : i32, i32, i32
  }
  func.func @transform_5(%arg0: i32) -> (i32, i32, i32) {
    %c0_i32 = arith.constant 0 : i32
    %c0_i32_0 = arith.constant 0 : i32
    %c0_i32_1 = arith.constant 0 : i32
    %c0_i32_2 = arith.constant 0 : i32
    return %c0_i32, %c0_i32_0, %c0_i32_1 : i32, i32, i32
  }
  func.func @transform_6(%arg0: i32) -> (i32, i32, i32, i32) {
    %c0_i32 = arith.constant 0 : i32
    %c0_i32_0 = arith.constant 0 : i32
    %c0_i32_1 = arith.constant 0 : i32
    %c0_i32_2 = arith.constant 0 : i32
    %c0_i32_3 = arith.constant 0 : i32
    return %c0_i32, %c0_i32_0, %c0_i32_1, %c0_i32_2 : i32, i32, i32, i32
  }
  func.func @transform_7(%arg0: i32) -> (i32, i32, i32) {
    %c0_i32 = arith.constant 0 : i32
    %c0_i32_0 = arith.constant 0 : i32
    %c0_i32_1 = arith.constant 0 : i32
    %c0_i32_2 = arith.constant 0 : i32
    return %c0_i32, %c0_i32_0, %c0_i32_1 : i32, i32, i32
  }
  func.func @transform_8(%arg0: i32) -> (i32, i32) {
    %c0_i32 = arith.constant 0 : i32
    %c0_i32_0 = arith.constant 0 : i32
    return %arg0, %c0_i32 : i32, i32
  }
}

</mosaic_0001>

<bundles_post_ra>
// kernel: res_projection_forward.1
= control target key start
LH: loop header
LB: loop body
LE: loop exit
PB: predicated region body
PF: predicated region fallthrough
CT: control target
= control target key end

     0   :  { %v4084_v1 = vmov 0   ;;  %vm204_vm0 = vcmask 64512   ;;  %v4085_v20 = vmov 0.0   ;;  %v50_v25 = vlaneseq  ;;  %s5030_s2 = inlined_call_operand.vmem [shape: bf16[4,128,256], index: 2, kind: input, shape index: {}]   ;;  %s5031_s0 = inlined_call_operand.vmem [shape: f32[8,128], index: 0, kind: input, shape index: {}]   ;;  %s5032_s1 = inlined_call_operand.vmem [shape: bf16[4,24,8], index: 1, kind: input, shape index: {}]   ;;  %s5033_s6 = inlined_call_operand.vmem [shape: bf16[4,3,128,128], index: 6, kind: input, shape index: {}]   ;;  %s5034_s3 = inlined_call_operand.vmem [shape: f32[4,1,256], index: 3, kind: input, shape index: {}]   ;;  %s5035_s4 = inlined_call_operand.vmem [shape: bf16[4,128,128], index: 4, kind: input, shape index: {}]   ;;  %s5036_s5 = inlined_call_operand.vmem [shape: f32[4,1,128], index: 5, kind: input, shape index: {}]   ;;  %s5037_s7 = inlined_call_operand.vmem [shape: f32[4,1,128], index: 7, kind: input, shape index: {}]   ;;  %s5038_s8 = inlined_call_operand.vmem [shape: f32[8,128], index: 8, kind: output, shape index: {}]  }
   0x1   :  { %v3804_v0 = vld [vmem:[%s5030_s2 + $0x4] ss:$8 sps:$4 sm:$0xff]   ;;  %172 = vmatprep.mubr.bf16.mxu0 %v4084_v1  ;;  %v3806_v2 = vld [vmem:[%s5030_s2] ss:$8 sps:$4 sm:$0xff]   ;;  %v3807_v3 = vld [vmem:[%s5030_s2 + $0x14] ss:$8 sps:$4 sm:$0xff]  }
   0x2   :  { %140 = vmatprep.subr.bf16.mxu0 %v3804_v0  ;;  %v3809_v4 = vld [vmem:[%s5030_s2 + $0x10] ss:$8 sps:$4 sm:$0xff]   ;;  %v3810_v5 = vld [vmem:[%s5030_s2 + $0x24] ss:$8 sps:$4 sm:$0xff]   ;;  %v3812_v6 = vld [vmem:[%s5030_s2 + $0x20] ss:$8 sps:$4 sm:$0xff]  }
   0x3   :  { %141 = vmatpush1.bf16.msra.mxu0 %v3806_v2  ;;  %v3813_v7 = vld [vmem:[%s5030_s2 + $0x34] ss:$8 sps:$4 sm:$0xff]   ;;  %v3815_v8 = vld [vmem:[%s5030_s2 + $0x30] ss:$8 sps:$4 sm:$0xff]   ;;  %v3816_v9 = vld [vmem:[%s5030_s2 + $0x44] ss:$8 sps:$4 sm:$0xff]  }
   0x4   :  { %142 = vmatprep.subr.bf16.mxu0 %v3807_v3  ;;  %v3818_v10 = vld [vmem:[%s5030_s2 + $0x40] ss:$8 sps:$4 sm:$0xff]   ;;  %v3819_v11 = vld [vmem:[%s5030_s2 + $0x54] ss:$8 sps:$4 sm:$0xff]   ;;  %v3821_v12 = vld [vmem:[%s5030_s2 + $0x50] ss:$8 sps:$4 sm:$0xff]  }
   0x5   :  { %v3822_v13 = vld [vmem:[%s5030_s2 + $0x64] ss:$8 sps:$4 sm:$0xff]   ;;  %v3824_v14 = vld [vmem:[%s5030_s2 + $0x60] ss:$8 sps:$4 sm:$0xff]   ;;  %v3825_v15 = vld [vmem:[%s5030_s2 + $0x74] ss:$8 sps:$4 sm:$0xff]  }
   0x6   :  { %v3827_v16 = vld [vmem:[%s5030_s2 + $0x70] ss:$8 sps:$4 sm:$0xff]   ;;  %v4184_v17 = vld [vmem:[%s5031_s0] sm:$0xff]  ;;  %v3832_v22 = vld [vmem:[%s5033_s6 + $0x8] sm:$0xff]   ;;  %v51_v27 = vshrl.u32 %v50_v25, 7  ;;  %vm211_vm1 = vcmask 1043456  }
   0x7   :  { %143 = vmatpush1.bf16.msra.mxu0 %v3809_v4  ;;  %v31_v18 = vpack.c.bf16 %v4184_v17, %v4184_v17  ;;  %v3828_v19 = vld [vmem:[%s5032_s1] sm:$0xff]   ;;  %v3834_v23 = vld [vmem:[%s5033_s6 + $0x10] sm:$0xff]   ;;  %v3836_v24 = vld [vmem:[%s5033_s6 + $0x18] sm:$0xff]   ;;  %vm4086_vm2 = vmmov 0  }
   0x8   :  { %144 = vmatprep.subr.bf16.mxu0 %v3810_v5  ;;  %3455 = vmatprep.mubr.msk.bf16.mxu1 %vm204_vm0, %v3828_v19  ;;  %v3830_v21 = vld [vmem:[%s5033_s6] sm:$0xff]   ;;  %v3840_v28 = vld [vmem:[%s5033_s6 + $0x28] sm:$0xff]   ;;  %v4216_v29 = vsub.s32 1, %v51_v27  ;;  %v3842_v30 = vld [vmem:[%s5033_s6 + $0x30] sm:$0xff]   ;;  %v4227_v41 = vsub.s32 0, %v51_v27 }
   0x9   :  { %v3838_v26 = vld [vmem:[%s5033_s6 + $0x20] sm:$0xff]   ;;  %v3829_v52 = vld [vmem:[%s5032_s1 + $0x8] ss:$0 sps:$4 sm:$0xff]   ;;  %v3835_v55 = vld [vmem:[%s5033_s6 + $0x50] sm:$0xff]  }
   0xa   :  { %v48_v31 = vld [vmem:[%s5034_s3] sm:$0x3]  ;;  %v3833_v54 = vld [vmem:[%s5033_s6 + $0x48] sm:$0xff]   ;;  %v3837_v56 = vld [vmem:[%s5033_s6 + $0x58] sm:$0xff]  }
   0xb   :  { %145 = vmatpush1.bf16.msra.mxu0 %v3812_v6  ;;  %v57_v32 = vrot.slane %v48_v31, %v4216_v29  ;;  %v53_v42 = vrot.slane %v48_v31, %v4227_v41  ;;  %v3831_v53 = vld [vmem:[%s5033_s6 + $0x40] sm:$0xff]   ;;  %v3841_v58 = vld [vmem:[%s5033_s6 + $0x68] sm:$0xff]   ;;  %v3843_v59 = vld [vmem:[%s5033_s6 + $0x70] sm:$0xff]  }
   0xc   :  { %146 = vmatprep.subr.bf16.mxu0 %v3813_v7  ;;  %v3839_v57 = vld [vmem:[%s5033_s6 + $0x60] sm:$0xff]   ;;  %v3844_v60 = vld [vmem:[%s5033_s6 + $0x38] sm:$0xff]   ;;  %v3848_v7 = vld [vmem:[%s5035_s4 + $0x8] sm:$0xff]  }
   0xd   :  { %v3845_v61 = vld [vmem:[%s5033_s6 + $0x78] sm:$0xff]   ;;  %v3846_v3 = vld [vmem:[%s5035_s4] sm:$0xff]   ;;  %v3859_v19 = vld [vmem:[%s5033_s6 + $0xb0] sm:$0xff]  }
   0xe   :  { %v3847_v5 = vld [vmem:[%s5033_s6 + $0x80] sm:$0xff]   ;;  %v3865_v27 = vld [vmem:[%s5030_s2 + $0x90] ss:$8 sps:$4 sm:$0xff]   ;;  %v3873_v31 = vld [vmem:[%s5030_s2 + $0xb4] ss:$8 sps:$4 sm:$0xff]  }
   0xf   :  { %147 = vmatpush1.bf16.msra.mxu0 %v3815_v8  ;;  %v3849_v8 = vld [vmem:[%s5033_s6 + $0x88] sm:$0xff]  }
  0x10   :  { %148 = vmatprep.subr.bf16.mxu0 %v3816_v9  ;;  %v3850_v9 = vld [vmem:[%s5035_s4 + $0x10] sm:$0xff]   ;;  %v3862_v25 = vld [vmem:[%s5030_s2 + $0x80] ss:$8 sps:$4 sm:$0xff]  }
  0x13   :  { %149 = vmatpush1.bf16.msra.mxu0 %v3818_v10  ;;  %v3851_v10 = vld [vmem:[%s5033_s6 + $0x90] sm:$0xff]  }
  0x14   :  { %150 = vmatprep.subr.bf16.mxu0 %v3819_v11  ;;  %v3852_v11 = vld [vmem:[%s5035_s4 + $0x18] sm:$0xff]  }
  0x17   :  { %151 = vmatpush1.bf16.msra.mxu0 %v3821_v12  ;;  %v3853_v12 = vld [vmem:[%s5033_s6 + $0x98] sm:$0xff]  }
  0x18   :  { %152 = vmatprep.subr.bf16.mxu0 %v3822_v13  ;;  %v3854_v13 = vld [vmem:[%s5035_s4 + $0x20] sm:$0xff]  }
  0x1b   :  { %153 = vmatpush1.bf16.msra.mxu0 %v3824_v14  ;;  %v3855_v14 = vld [vmem:[%s5033_s6 + $0xa0] sm:$0xff]  }
  0x1c   :  { %154 = vmatprep.subr.bf16.mxu0 %v3825_v15  ;;  %v3856_v15 = vld [vmem:[%s5035_s4 + $0x28] sm:$0xff]  }
  0x1f   :  { %155 = vmatpush1.bf16.msra.mxu0 %v3827_v16  ;;  %v3857_v16 = vld [vmem:[%s5033_s6 + $0xa8] sm:$0xff]  }
  0x20   :  { %3479 = vmatprep.subr.bf16.mxu0 %v4085_v20 }
  0x22   :  { %173 = vmatmul.mubr.bf16.vlgmr.msra.gmra.mrb[0].mxu0 %v31_v18  ;;  %v3858_v18 = vld [vmem:[%s5035_s4 + $0x30] sm:$0xff]  }
  0x23   :  { %3480 = vmatpush3.bf16.msra.mxu0 %v3830_v21  ;;  %3495 = vmatprep.mubr.msk.bf16.mxu0 %vm4086_vm2, %v4085_v20  ;;  %v3860_v21 = vld [vmem:[%s5035_s4 + $0x38] sm:$0xff]  }
  0x24   :  { %3481 = vmatprep.subr.bf16.mxu0 %v4085_v20 }
  0x27   :  { %3482 = vmatpush3.bf16.msra.mxu0 %v3832_v22  ;;  %v3861_v22 = vld [vmem:[%s5033_s6 + $0xb8] sm:$0xff]  }
  0x28   :  { %3483 = vmatprep.subr.bf16.mxu0 %v4085_v20 }
  0x2b   :  { %3484 = vmatpush3.bf16.msra.mxu0 %v3834_v23 }
  0x2c   :  { %3485 = vmatprep.subr.bf16.mxu0 %v4085_v20 }
  0x2f   :  { %3486 = vmatpush3.bf16.msra.mxu0 %v3836_v24  ;;  %v3864_v24 = vld [vmem:[%s5030_s2 + $0x84] ss:$8 sps:$4 sm:$0xff]  }
  0x30   :  { %3487 = vmatprep.subr.bf16.mxu0 %v4085_v20 }
  0x33   :  { %3488 = vmatpush3.bf16.msra.mxu0 %v3838_v26  ;;  %v3867_v26 = vld [vmem:[%s5030_s2 + $0x94] ss:$8 sps:$4 sm:$0xff]  }
  0x34   :  { %3489 = vmatprep.subr.bf16.mxu0 %v4085_v20 }
  0x37   :  { %3490 = vmatpush3.bf16.msra.mxu0 %v3840_v28  ;;  %v3870_v28 = vld [vmem:[%s5030_s2 + $0xa4] ss:$8 sps:$4 sm:$0xff]  }
  0x38   :  { %3491 = vmatprep.subr.bf16.mxu0 %v4085_v20 }
  0x3b   :  { %3492 = vmatpush3.bf16.msra.mxu0 %v3842_v30  ;;  %v3868_v30 = vld [vmem:[%s5030_s2 + $0xa0] ss:$8 sps:$4 sm:$0xff]  }
  0x3c   :  { %3493 = vmatprep.subr.bf16.mxu0 %v4085_v20 }
  0x3f   :  { %3494 = vmatpush3.bf16.msra.mxu0 %v3844_v60 }
  0x40   :  { %3519 = vmatprep.subr.bf16.mxu0 %v4085_v20 }
  0xf5   :  { %v174_v33 = vpop.f32.mrb[0].mxu0 }
  0xf6   :  { %v176_v34 = vpop.f32.mrb[1].mxu0  ;;  %v175_v43 = vadd.f32 %v174_v33, %v53_v42  ;;  %v3876_v33 = vld [vmem:[%s5030_s2 + $0xc4] ss:$8 sps:$4 sm:$0xff]  }
  0xf7   :  { %v177_v35 = vadd.f32 %v176_v34, %v57_v32  ;;  %v178_v36 = vpop.f32.mrb[2].mxu0  ;;  %v3871_v32 = vld [vmem:[%s5030_s2 + $0xb0] ss:$8 sps:$4 sm:$0xff]   ;;  %v3874_v34 = vld [vmem:[%s5030_s2 + $0xc0] ss:$8 sps:$4 sm:$0xff]  }
  0xf8   :  { %v179_v37 = vpop.f32.mrb[3].mxu0  ;;  %v3879_v36 = vld [vmem:[%s5030_s2 + $0xd4] ss:$8 sps:$4 sm:$0xff]  }
  0xf9   :  { %v2799_v38 = vmul.f32 -1.442695, %v177_v35  ;;  %v3877_v35 = vld [vmem:[%s5030_s2 + $0xd0] ss:$8 sps:$4 sm:$0xff]   ;;  %v3882_v37 = vld [vmem:[%s5030_s2 + $0xe4] ss:$8 sps:$4 sm:$0xff]  }
  0xfb   :  { %4036 = vpow2.f32 %v2799_v38  ;;  %v3880_v38 = vld [vmem:[%s5030_s2 + $0xe0] ss:$8 sps:$4 sm:$0xff]  }
 0x105   :  { %v4037_v39 = vpop.eup %4036 }
 0x106   :  { %v184_v40 = vadd.f32 1.0, %v4037_v39  ;;  %v3885_v39 = vld [vmem:[%s5030_s2 + $0xf4] ss:$8 sps:$4 sm:$0xff]  }
 0x108   :  { %4038 = vrcp.f32 %v184_v40  ;;  %v3883_v40 = vld [vmem:[%s5030_s2 + $0xf0] ss:$8 sps:$4 sm:$0xff]  }
 0x112   :  { %v4039_v44 = vpop.eup %4038 }
 0x113   :  { %v187_v45 = vmul.f32 %v4039_v44, %v175_v43  ;;  %v188_v46 = vsub.f32 1.0, %v4039_v44 }
 0x115   :  { %v189_v47 = vmul.f32 %v188_v46, %v4184_v17 }
 0x117   :  { %v190_v48 = vadd.f32 %v189_v47, %v187_v45 }
 0x119   :  { %4040 = vtanh.f32 %v190_v48 }
 0x123   :  { %v4231_v49 = vpop.eup %4040 }
 0x124   :  { %v4235_v50 = vpack.c.bf16 %v4231_v49, %v4231_v49 }
 0x126   :  { %3797 = vmatprep.subr.msk.bf16.mxu1 %vm211_vm1, %v4235_v50  ;;  %v213_v51 = vsel %vm211_vm1, %v4235_v50, 0 }
 0x127   :  { %3454 = vmatpush3.bf16.msra.mxu1 %v213_v51 }
 0x128   :  { %3459 = vmatprep.subr.bf16.mxu1 %v4085_v20 }
 0x12a   :  { %3456 = vmatmul.mubr.msk.bf16.vlgmr.msra.gmra.mrb[0].mxu1 %vm204_vm0, %v3829_v52  ;;  %v2861_v52 = vld [vmem:[%s5036_s5] ss:$0 sm:$0xff] }
 0x12b   :  { %3460 = vmatpush3.bf16.msra.mxu1 %v3831_v53  ;;  %3475 = vmatprep.mubr.msk.bf16.mxu1 %vm4086_vm2, %v4085_v20 }
 0x12c   :  { %3461 = vmatprep.subr.bf16.mxu1 %v4085_v20 }
 0x12f   :  { %3462 = vmatpush3.bf16.msra.mxu1 %v3833_v54 }
 0x130   :  { %3463 = vmatprep.subr.bf16.mxu1 %v4085_v20 }
 0x133   :  { %3464 = vmatpush3.bf16.msra.mxu1 %v3835_v55 }
 0x134   :  { %3465 = vmatprep.subr.bf16.mxu1 %v4085_v20 }
 0x137   :  { %3466 = vmatpush3.bf16.msra.mxu1 %v3837_v56 }
 0x138   :  { %3467 = vmatprep.subr.bf16.mxu1 %v4085_v20 }
 0x13b   :  { %3468 = vmatpush3.bf16.msra.mxu1 %v3839_v57 }
 0x13c   :  { %3469 = vmatprep.subr.bf16.mxu1 %v4085_v20 }
 0x13f   :  { %3470 = vmatpush3.bf16.msra.mxu1 %v3841_v58 }
 0x140   :  { %3471 = vmatprep.subr.bf16.mxu1 %v4085_v20 }
 0x143   :  { %3472 = vmatpush3.bf16.msra.mxu1 %v3843_v59 }
 0x144   :  { %3473 = vmatprep.subr.bf16.mxu1 %v4085_v20 }
 0x147   :  { %3474 = vmatpush3.bf16.msra.mxu1 %v3845_v61 }
 0x148   :  { %3499 = vmatprep.subr.bf16.mxu1 %v4085_v20 }
 0x1fd   :  { %v3457_v62 = vpop.f32.mrb[0].mxu1 }
 0x1fe   :  { %v249_v63 = vpop.f32.mrb[1].mxu1  ;;  %v264_v23 = vpack.c.bf16 %v3457_v62, %v3457_v62 }
 0x1ff   :  { %v3458_v0 = vpop.f32.mrb[2].mxu1 }
 0x200   :  { %v252_v2 = vpop.f32.mrb[3].mxu1 }
 0x201   :  { %v263_v4 = vpack.c.bf16 %v252_v2, %v249_v63 }
 0x203   :  { %v299_v6 = vrot.slane %v263_v4, 4  ;;  %3496 = vmatmul.mubr.bf16.vlgmr.msra.gmra.mrb[4].mxu0 %v263_v4 }
 0x204   :  { %3520 = vmatpush3.bf16.msra.mxu0 %v3846_v3  ;;  %3535 = vmatprep.mubr.msk.bf16.mxu0 %vm4086_vm2, %v4085_v20  ;;  %v2860_v3 = vld [vmem:[%s5037_s7] ss:$0 sm:$0xff] }
 0x205   :  { %3476 = vmatmul.mubr.bf16.vlgmr.msra.gmra.mrb[4].mxu1 %v299_v6  ;;  %3521 = vmatprep.subr.bf16.mxu0 %v4085_v20 }
 0x206   :  { %3500 = vmatpush3.bf16.msra.mxu1 %v3847_v5  ;;  %3515 = vmatprep.mubr.msk.bf16.mxu1 %vm4086_vm2, %v4085_v20 }
 0x207   :  { %3501 = vmatprep.subr.bf16.mxu1 %v4085_v20 }
 0x208   :  { %3522 = vmatpush3.bf16.msra.mxu0 %v3848_v7 }
 0x209   :  { %3523 = vmatprep.subr.bf16.mxu0 %v4085_v20 }
 0x20a   :  { %3502 = vmatpush3.bf16.msra.mxu1 %v3849_v8 }
 0x20b   :  { %3503 = vmatprep.subr.bf16.mxu1 %v4085_v20 }
 0x20c   :  { %3524 = vmatpush3.bf16.msra.mxu0 %v3850_v9 }
 0x20d   :  { %3525 = vmatprep.subr.bf16.mxu0 %v4085_v20 }
 0x20e   :  { %3504 = vmatpush3.bf16.msra.mxu1 %v3851_v10 }
 0x20f   :  { %3505 = vmatprep.subr.bf16.mxu1 %v4085_v20 }
 0x210   :  { %3526 = vmatpush3.bf16.msra.mxu0 %v3852_v11 }
 0x211   :  { %3527 = vmatprep.subr.bf16.mxu0 %v4085_v20 }
 0x212   :  { %3506 = vmatpush3.bf16.msra.mxu1 %v3853_v12 }
 0x213   :  { %3507 = vmatprep.subr.bf16.mxu1 %v4085_v20 }
 0x214   :  { %3528 = vmatpush3.bf16.msra.mxu0 %v3854_v13  ;;  %v3886_v13 = vld [vmem:[%s5032_s1 + $0xc] sm:$0xff]  }
 0x215   :  { %3529 = vmatprep.subr.bf16.mxu0 %v4085_v20 }
 0x216   :  { %3508 = vmatpush3.bf16.msra.mxu1 %v3855_v14  ;;  %v3893_v14 = vld [vmem:[%s5033_s6 + $0x110] sm:$0xff]  }
 0x217   :  { %3509 = vmatprep.subr.bf16.mxu1 %v4085_v20 }
 0x218   :  { %3530 = vmatpush3.bf16.msra.mxu0 %v3856_v15  ;;  %v3895_v15 = vld [vmem:[%s5033_s6 + $0x118] sm:$0xff]  }
 0x219   :  { %3531 = vmatprep.subr.bf16.mxu0 %v4085_v20 }
 0x21a   :  { %3510 = vmatpush3.bf16.msra.mxu1 %v3857_v16  ;;  %v3897_v16 = vld [vmem:[%s5033_s6 + $0x120] sm:$0xff]  }
 0x21b   :  { %3511 = vmatprep.subr.bf16.mxu1 %v4085_v20 }
 0x21c   :  { %3532 = vmatpush3.bf16.msra.mxu0 %v3858_v18  ;;  %v3899_v18 = vld [vmem:[%s5033_s6 + $0x128] sm:$0xff]  }
 0x21d   :  { %3533 = vmatprep.subr.bf16.mxu0 %v4085_v20 }
 0x21e   :  { %3512 = vmatpush3.bf16.msra.mxu1 %v3859_v19  ;;  %v2887_v19 = vld [vmem:[%s5034_s3 + $0x2] sm:$0x3] }
 0x21f   :  { %3513 = vmatprep.subr.bf16.mxu1 %v4085_v20 }
 0x220   :  { %3534 = vmatpush3.bf16.msra.mxu0 %v3860_v21  ;;  %v742_v21 = vrot.slane %v2887_v19, %v4216_v29 }
 0x222   :  { %3514 = vmatpush3.bf16.msra.mxu1 %v3861_v22 }
 0x223   :  { %3536 = vmatmul.mubr.bf16.vlgmr.msra.gmra.mrb[8].mxu0 %v4235_v50  ;;  %825 = vmatprep.subr.bf16.mxu1 %v3864_v24 }
 0x224   :  { %3541 = vmatprep.mubr.msk.bf16.mxu0 %vm204_vm0, %v3886_v13  ;;  %v3919_v13 = vld [vmem:[%s5033_s6 + $0x178] sm:$0xff]  }
 0x225   :  { %3516 = vmatmul.mubr.bf16.vlgmr.msra.gmra.mrb[8].mxu1 %v264_v23 }
 0x226   :  { %857 = vmatprep.mubr.bf16.mxu1 %v4084_v1  ;;  %826 = vmatpush1.bf16.msra.mxu1 %v3862_v25 }
 0x227   :  { %827 = vmatprep.subr.bf16.mxu1 %v3867_v26 }
 0x22a   :  { %828 = vmatpush1.bf16.msra.mxu1 %v3865_v27 }
 0x22b   :  { %829 = vmatprep.subr.bf16.mxu1 %v3870_v28 }
 0x22e   :  { %830 = vmatpush1.bf16.msra.mxu1 %v3868_v30 }
 0x22f   :  { %831 = vmatprep.subr.bf16.mxu1 %v3873_v31  ;;  %v738_v31 = vrot.slane %v2887_v19, %v4227_v41  ;;  %v3926_v19 = vld [vmem:[%s5030_s2 + $0x120] ss:$8 sps:$4 sm:$0xff]  }
 0x232   :  { %832 = vmatpush1.bf16.msra.mxu1 %v3871_v32 }
 0x233   :  { %833 = vmatprep.subr.bf16.mxu1 %v3876_v33 }
 0x236   :  { %834 = vmatpush1.bf16.msra.mxu1 %v3874_v34 }
 0x237   :  { %835 = vmatprep.subr.bf16.mxu1 %v3879_v36 }
 0x23a   :  { %836 = vmatpush1.bf16.msra.mxu1 %v3877_v35 }
 0x23b   :  { %837 = vmatprep.subr.bf16.mxu1 %v3882_v37 }
 0x23e   :  { %838 = vmatpush1.bf16.msra.mxu1 %v3880_v38 }
 0x23f   :  { %839 = vmatprep.subr.bf16.mxu1 %v3885_v39 }
 0x242   :  { %840 = vmatpush1.bf16.msra.mxu1 %v3883_v40 }
 0x243   :  { %3545 = vmatprep.subr.bf16.mxu1 %v4085_v20 }
 0x2d6   :  { %v471_v42 = vpop.f32.mrb[4].mxu0 }
 0x2d7   :  { %v3497_v43 = vpop.f32.mrb[5].mxu0 }
 0x2d8   :  { %v383_v44 = vpop.f32.mrb[4].mxu1  ;;  %v474_v45 = vpop.f32.mrb[6].mxu0  ;;  %v3888_v43 = vld [vmem:[%s5033_s6 + $0xc0] sm:$0xff]  }
 0x2d9   :  { %v472_v46 = vadd.f32 %v471_v42, %v383_v44  ;;  %v3477_v47 = vpop.f32.mrb[5].mxu1  ;;  %v3498_v48 = vpop.f32.mrb[7].mxu0  ;;  %v3887_v42 = vld [vmem:[%s5032_s1 + $0x14] ss:$0 sps:$4 sm:$0xff]   ;;  %v3890_v44 = vld [vmem:[%s5033_s6 + $0xc8] sm:$0xff]  }
 0x2da   :  { %v386_v50 = vpop.f32.mrb[6].mxu1  ;;  %v3892_v45 = vld [vmem:[%s5033_s6 + $0xd0] sm:$0xff]   ;;  %v3896_v47 = vld [vmem:[%s5033_s6 + $0xe0] sm:$0xff]   ;;  %v3898_v48 = vld [vmem:[%s5033_s6 + $0xe8] sm:$0xff]  }
 0x2db   :  { %v3478_v51 = vpop.f32.mrb[7].mxu1  ;;  %v3900_v50 = vld [vmem:[%s5033_s6 + $0xf0] sm:$0xff]  }
 0x2dc   :  { %v3901_v51 = vld [vmem:[%s5033_s6 + $0x130] sm:$0xff]  }
 0x2f6   :  { %v696_v53 = vpop.f32.mrb[8].mxu0 }
 0x2f7   :  { %v697_v54 = vadd.f32 %v2861_v52, %v696_v53  ;;  %v3537_v55 = vpop.f32.mrb[9].mxu0  ;;  %v3902_v52 = vld [vmem:[%s5033_s6 + $0xf8] sm:$0xff]  }
 0x2f8   :  { %v576_v56 = vpop.f32.mrb[8].mxu1  ;;  %v699_v57 = vpop.f32.mrb[10].mxu0  ;;  %v3903_v53 = vld [vmem:[%s5033_s6 + $0x138] sm:$0xff]  }
 0x2f9   :  { %v2870_v58 = vmul.f32 -1.442695, %v697_v54  ;;  %v582_v59 = vadd.f32 %v576_v56, %v472_v46  ;;  %v3517_v60 = vpop.f32.mrb[9].mxu1  ;;  %v3538_v61 = vpop.f32.mrb[11].mxu0  ;;  %v3894_v46 = vld [vmem:[%s5033_s6 + $0xd8] sm:$0xff]  }
 0x2fa   :  { %v579_v62 = vpop.f32.mrb[10].mxu1  ;;  %v3905_v60 = vld [vmem:[%s5033_s6 + $0x140] sm:$0xff]  }
 0x2fb   :  { %4042 = vpow2.f32 %v2870_v58  ;;  %v3518_v63 = vpop.f32.mrb[11].mxu1  ;;  %v590_v4 = vadd.f32 %v2860_v3, %v582_v59  ;;  %v3904_v58 = vld [vmem:[%s5035_s4 + $0x40] sm:$0xff]   ;;  %v3906_v62 = vld [vmem:[%s5035_s4 + $0x48] sm:$0xff]   ;;  %v3910_v3 = vld [vmem:[%s5035_s4 + $0x58] sm:$0xff]  }
 0x2fc   :  { %v3907_v63 = vld [vmem:[%s5033_s6 + $0x148] sm:$0xff]  }
 0x305   :  { %v4043_v0 = vpop.eup %4042 }
 0x306   :  { %v705_v2 = vadd.f32 1.0, %v4043_v0  ;;  %v3908_v0 = vld [vmem:[%s5035_s4 + $0x50] sm:$0xff]  }
 0x308   :  { %4044 = vrcp.f32 %v705_v2  ;;  %v3909_v2 = vld [vmem:[%s5033_s6 + $0x150] sm:$0xff]  }
 0x312   :  { %v4045_v5 = vpop.eup %4044 }
 0x313   :  { %v708_v6 = vmul.f32 %v4045_v5, %v590_v4  ;;  %v709_v7 = vsub.f32 1.0, %v4045_v5  ;;  %v3911_v4 = vld [vmem:[%s5033_s6 + $0x158] sm:$0xff]   ;;  %v3912_v5 = vld [vmem:[%s5035_s4 + $0x60] sm:$0xff]  }
 0x315   :  { %v710_v8 = vmul.f32 %v4231_v49, %v709_v7  ;;  %v3889_v49 = vld [vmem:[%s5033_s6 + $0x100] sm:$0xff]   ;;  %v3914_v7 = vld [vmem:[%s5035_s4 + $0x68] sm:$0xff]  }
 0x317   :  { %v711_v9 = vadd.f32 %v710_v8, %v708_v6  ;;  %v3913_v6 = vld [vmem:[%s5033_s6 + $0x160] sm:$0xff]   ;;  %v3915_v8 = vld [vmem:[%s5033_s6 + $0x168] sm:$0xff]  }
 0x319   :  { %4046 = vtanh.f32 %v711_v9  ;;  %v3916_v9 = vld [vmem:[%s5035_s4 + $0x70] sm:$0xff]  }
 0x323   :  { %v4047_v10 = vpop.eup %4046 }
 0x324   :  { %v4411_v11 = vadd.f32 %v4047_v10, %v4184_v17  ;;  %v3891_v17 = vld [vmem:[%s5033_s6 + $0x108] sm:$0xff]   ;;  %v3917_v10 = vld [vmem:[%s5033_s6 + $0x170] sm:$0xff]  }
 0x326   :  { %v714_v12 = vpack.c.bf16 %v4411_v11, %v4411_v11 }
 0x328   :  { %858 = vmatmul.mubr.bf16.vlgmr.msra.gmra.mrb[12].mxu1 %v714_v12  ;;  %v3918_v12 = vld [vmem:[%s5035_s4 + $0x78] sm:$0xff]  }
 0x329   :  { %3561 = vmatprep.mubr.msk.bf16.mxu1 %vm4086_vm2, %v4085_v20  ;;  %3546 = vmatpush3.bf16.msra.mxu1 %v3889_v49 }
 0x32a   :  { %3547 = vmatprep.subr.bf16.mxu1 %v4085_v20 }
 0x32d   :  { %3548 = vmatpush3.bf16.msra.mxu1 %v3891_v17  ;;  %v3922_v17 = vld [vmem:[%s5030_s2 + $0x104] ss:$8 sps:$4 sm:$0xff]  }
 0x32e   :  { %3549 = vmatprep.subr.bf16.mxu1 %v4085_v20 }
 0x331   :  { %3550 = vmatpush3.bf16.msra.mxu1 %v3893_v14  ;;  %v3920_v14 = vld [vmem:[%s5030_s2 + $0x100] ss:$8 sps:$4 sm:$0xff]  }
 0x332   :  { %3551 = vmatprep.subr.bf16.mxu1 %v4085_v20 }
 0x335   :  { %3552 = vmatpush3.bf16.msra.mxu1 %v3895_v15  ;;  %v3925_v15 = vld [vmem:[%s5030_s2 + $0x114] ss:$8 sps:$4 sm:$0xff]  }
 0x336   :  { %3553 = vmatprep.subr.bf16.mxu1 %v4085_v20 }
 0x339   :  { %3554 = vmatpush3.bf16.msra.mxu1 %v3897_v16  ;;  %v3923_v16 = vld [vmem:[%s5030_s2 + $0x110] ss:$8 sps:$4 sm:$0xff]  }
 0x33a   :  { %3555 = vmatprep.subr.bf16.mxu1 %v4085_v20 }
 0x33d   :  { %3556 = vmatpush3.bf16.msra.mxu1 %v3899_v18  ;;  %v3928_v18 = vld [vmem:[%s5030_s2 + $0x124] ss:$8 sps:$4 sm:$0xff]  }
 0x33e   :  { %3557 = vmatprep.subr.bf16.mxu1 %v4085_v20 }
 0x341   :  { %3558 = vmatpush3.bf16.msra.mxu1 %v3901_v51 }
 0x342   :  { %3559 = vmatprep.subr.bf16.mxu1 %v4085_v20 }
 0x345   :  { %3560 = vmatpush3.bf16.msra.mxu1 %v3903_v53 }
 0x346   :  { %3585 = vmatprep.subr.bf16.mxu1 %v4085_v20 }
 0x3fb   :  { %v859_v22 = vpop.f32.mrb[12].mxu1 }
 0x3fc   :  { %v861_v23 = vpop.f32.mrb[13].mxu1  ;;  %v860_v32 = vadd.f32 %v859_v22, %v738_v31  ;;  %v3929_v22 = vld [vmem:[%s5030_s2 + $0x130] ss:$8 sps:$4 sm:$0xff]  }
 0x3fd   :  { %v862_v24 = vadd.f32 %v861_v23, %v742_v21  ;;  %v863_v25 = vpop.f32.mrb[14].mxu1  ;;  %v3931_v21 = vld [vmem:[%s5030_s2 + $0x134] ss:$8 sps:$4 sm:$0xff]   ;;  %v3934_v23 = vld [vmem:[%s5030_s2 + $0x144] ss:$8 sps:$4 sm:$0xff]  }
 0x3fe   :  { %v864_v26 = vpop.f32.mrb[15].mxu1  ;;  %v3935_v25 = vld [vmem:[%s5030_s2 + $0x150] ss:$8 sps:$4 sm:$0xff]  }
 0x3ff   :  { %v2904_v27 = vmul.f32 -1.442695, %v862_v24  ;;  %v3932_v24 = vld [vmem:[%s5030_s2 + $0x140] ss:$8 sps:$4 sm:$0xff]   ;;  %v3937_v26 = vld [vmem:[%s5030_s2 + $0x154] ss:$8 sps:$4 sm:$0xff]  }
 0x400   :  { %v3941_v31 = vld [vmem:[%s5030_s2 + $0x170] ss:$8 sps:$4 sm:$0xff]  }
 0x401   :  { %4048 = vpow2.f32 %v2904_v27  ;;  %v3940_v27 = vld [vmem:[%s5030_s2 + $0x164] ss:$8 sps:$4 sm:$0xff]  }
 0x40b   :  { %v4049_v28 = vpop.eup %4048 }
 0x40c   :  { %v869_v30 = vadd.f32 1.0, %v4049_v28  ;;  %v3938_v28 = vld [vmem:[%s5030_s2 + $0x160] ss:$8 sps:$4 sm:$0xff]  }
 0x40e   :  { %4050 = vrcp.f32 %v869_v30  ;;  %v3943_v30 = vld [vmem:[%s5030_s2 + $0x174] ss:$8 sps:$4 sm:$0xff]  }
 0x418   :  { %v4051_v33 = vpop.eup %4050 }
 0x419   :  { %v872_v34 = vmul.f32 %v4051_v33, %v860_v32  ;;  %v873_v35 = vsub.f32 1.0, %v4051_v33 }
 0x41b   :  { %v874_v36 = vmul.f32 %v873_v35, %v4411_v11 }
 0x41d   :  { %v875_v37 = vadd.f32 %v874_v36, %v872_v34 }
 0x41f   :  { %4052 = vtanh.f32 %v875_v37 }
 0x429   :  { %v4451_v38 = vpop.eup %4052 }
 0x42a   :  { %v4455_v39 = vpack.c.bf16 %v4451_v38, %v4451_v38 }
 0x42c   :  { %3798 = vmatprep.subr.msk.bf16.mxu0 %vm211_vm1, %v4455_v39  ;;  %v897_v40 = vsel %vm211_vm1, %v4455_v39, 0 }
 0x42d   :  { %3540 = vmatpush3.bf16.msra.mxu0 %v897_v40 }
 0x42e   :  { %3565 = vmatprep.subr.bf16.mxu0 %v4085_v20 }
 0x430   :  { %3542 = vmatmul.mubr.msk.bf16.vlgmr.msra.gmra.mrb[12].mxu0 %vm204_vm0, %v3887_v42 }
 0x431   :  { %3566 = vmatpush3.bf16.msra.mxu0 %v3888_v43  ;;  %3581 = vmatprep.mubr.msk.bf16.mxu0 %vm4086_vm2, %v4085_v20  ;;  %v3003_v43 = vld [vmem:[%s5036_s5 + $0x1] ss:$0 sm:$0xff] }
 0x432   :  { %3567 = vmatprep.subr.bf16.mxu0 %v4085_v20 }
 0x435   :  { %3568 = vmatpush3.bf16.msra.mxu0 %v3890_v44 }
 0x436   :  { %3569 = vmatprep.subr.bf16.mxu0 %v4085_v20 }
 0x439   :  { %3570 = vmatpush3.bf16.msra.mxu0 %v3892_v45 }
 0x43a   :  { %3571 = vmatprep.subr.bf16.mxu0 %v4085_v20 }
 0x43d   :  { %3572 = vmatpush3.bf16.msra.mxu0 %v3894_v46 }
 0x43e   :  { %3573 = vmatprep.subr.bf16.mxu0 %v4085_v20 }
 0x441   :  { %3574 = vmatpush3.bf16.msra.mxu0 %v3896_v47 }
 0x442   :  { %3575 = vmatprep.subr.bf16.mxu0 %v4085_v20 }
 0x445   :  { %3576 = vmatpush3.bf16.msra.mxu0 %v3898_v48 }
 0x446   :  { %3577 = vmatprep.subr.bf16.mxu0 %v4085_v20 }
 0x449   :  { %3578 = vmatpush3.bf16.msra.mxu0 %v3900_v50 }
 0x44a   :  { %3579 = vmatprep.subr.bf16.mxu0 %v4085_v20 }
 0x44d   :  { %3580 = vmatpush3.bf16.msra.mxu0 %v3902_v52 }
 0x44e   :  { %3605 = vmatprep.subr.bf16.mxu0 %v4085_v20 }
 0x503   :  { %v3543_v54 = vpop.f32.mrb[12].mxu0 }
 0x504   :  { %v933_v55 = vpop.f32.mrb[13].mxu0  ;;  %v948_v49 = vpack.c.bf16 %v3543_v54, %v3543_v54 }
 0x505   :  { %v3544_v56 = vpop.f32.mrb[14].mxu0 }
 0x506   :  { %v936_v57 = vpop.f32.mrb[15].mxu0 }
 0x507   :  { %v947_v59 = vpack.c.bf16 %v936_v57, %v933_v55 }
 0x509   :  { %v984_v61 = vrot.slane %v947_v59, 4  ;;  %3582 = vmatmul.mubr.bf16.vlgmr.msra.gmra.mrb[16].mxu0 %v947_v59 }
 0x50a   :  { %3606 = vmatpush3.bf16.msra.mxu0 %v3904_v58  ;;  %3621 = vmatprep.mubr.msk.bf16.mxu0 %vm4086_vm2, %v4085_v20  ;;  %v2985_v58 = vld [vmem:[%s5037_s7 + $0x1] ss:$0 sm:$0xff] }
 0x50b   :  { %3562 = vmatmul.mubr.bf16.vlgmr.msra.gmra.mrb[16].mxu1 %v984_v61  ;;  %3607 = vmatprep.subr.bf16.mxu0 %v4085_v20 }
 0x50c   :  { %3586 = vmatpush3.bf16.msra.mxu1 %v3905_v60  ;;  %3601 = vmatprep.mubr.msk.bf16.mxu1 %vm4086_vm2, %v4085_v20 }
 0x50d   :  { %3587 = vmatprep.subr.bf16.mxu1 %v4085_v20 }
 0x50e   :  { %3608 = vmatpush3.bf16.msra.mxu0 %v3906_v62 }
 0x50f   :  { %3609 = vmatprep.subr.bf16.mxu0 %v4085_v20 }
 0x510   :  { %3588 = vmatpush3.bf16.msra.mxu1 %v3907_v63 }
 0x511   :  { %3589 = vmatprep.subr.bf16.mxu1 %v4085_v20 }
 0x512   :  { %3610 = vmatpush3.bf16.msra.mxu0 %v3908_v0 }
 0x513   :  { %3611 = vmatprep.subr.bf16.mxu0 %v4085_v20 }
 0x514   :  { %3590 = vmatpush3.bf16.msra.mxu1 %v3909_v2 }
 0x515   :  { %3591 = vmatprep.subr.bf16.mxu1 %v4085_v20 }
 0x516   :  { %3612 = vmatpush3.bf16.msra.mxu0 %v3910_v3 }
 0x517   :  { %3613 = vmatprep.subr.bf16.mxu0 %v4085_v20 }
 0x518   :  { %3592 = vmatpush3.bf16.msra.mxu1 %v3911_v4 }
 0x519   :  { %3593 = vmatprep.subr.bf16.mxu1 %v4085_v20 }
 0x51a   :  { %3614 = vmatpush3.bf16.msra.mxu0 %v3912_v5  ;;  %v3944_v5 = vld [vmem:[%s5032_s1 + $0x18] sm:$0xff]  }
 0x51b   :  { %3615 = vmatprep.subr.bf16.mxu0 %v4085_v20 }
 0x51c   :  { %3594 = vmatpush3.bf16.msra.mxu1 %v3913_v6  ;;  %v3950_v6 = vld [vmem:[%s5033_s6 + $0x190] sm:$0xff]  }
 0x51d   :  { %3595 = vmatprep.subr.bf16.mxu1 %v4085_v20 }
 0x51e   :  { %3616 = vmatpush3.bf16.msra.mxu0 %v3914_v7  ;;  %v3952_v7 = vld [vmem:[%s5033_s6 + $0x198] sm:$0xff]  }
 0x51f   :  { %3617 = vmatprep.subr.bf16.mxu0 %v4085_v20 }
 0x520   :  { %3596 = vmatpush3.bf16.msra.mxu1 %v3915_v8  ;;  %v3954_v8 = vld [vmem:[%s5033_s6 + $0x1a0] sm:$0xff]  }
 0x521   :  { %3597 = vmatprep.subr.bf16.mxu1 %v4085_v20 }
 0x522   :  { %3618 = vmatpush3.bf16.msra.mxu0 %v3916_v9  ;;  %v3956_v9 = vld [vmem:[%s5033_s6 + $0x1a8] sm:$0xff]  }
 0x523   :  { %3619 = vmatprep.subr.bf16.mxu0 %v4085_v20 }
 0x524   :  { %3598 = vmatpush3.bf16.msra.mxu1 %v3917_v10  ;;  %v3958_v10 = vld [vmem:[%s5033_s6 + $0x1b0] sm:$0xff]  }
 0x525   :  { %3599 = vmatprep.subr.bf16.mxu1 %v4085_v20 }
 0x526   :  { %3620 = vmatpush3.bf16.msra.mxu0 %v3918_v12  ;;  %v3029_v12 = vld [vmem:[%s5034_s3 + $0x4] sm:$0x3] }
 0x528   :  { %3600 = vmatpush3.bf16.msra.mxu1 %v3919_v13  ;;  %v1430_v13 = vrot.slane %v3029_v12, %v4216_v29 }
 0x529   :  { %3622 = vmatmul.mubr.bf16.vlgmr.msra.gmra.mrb[20].mxu0 %v4455_v39  ;;  %1513 = vmatprep.subr.bf16.mxu1 %v3922_v17 }
 0x52a   :  { %3627 = vmatprep.mubr.msk.bf16.mxu0 %vm204_vm0, %v3944_v5  ;;  %v3977_v5 = vld [vmem:[%s5033_s6 + $0x238] sm:$0xff]  }
 0x52b   :  { %3602 = vmatmul.mubr.bf16.vlgmr.msra.gmra.mrb[20].mxu1 %v948_v49 }
 0x52c   :  { %1545 = vmatprep.mubr.bf16.mxu1 %v4084_v1  ;;  %1514 = vmatpush1.bf16.msra.mxu1 %v3920_v14 }
 0x52d   :  { %1515 = vmatprep.subr.bf16.mxu1 %v3925_v15 }
 0x530   :  { %1516 = vmatpush1.bf16.msra.mxu1 %v3923_v16 }
 0x531   :  { %1517 = vmatprep.subr.bf16.mxu1 %v3928_v18 }
 0x534   :  { %1518 = vmatpush1.bf16.msra.mxu1 %v3926_v19 }
 0x535   :  { %1519 = vmatprep.subr.bf16.mxu1 %v3931_v21 }
 0x538   :  { %1520 = vmatpush1.bf16.msra.mxu1 %v3929_v22  ;;  %v1426_v22 = vrot.slane %v3029_v12, %v4227_v41  ;;  %v3987_v12 = vld [vmem:[%s5030_s2 + $0x1b0] ss:$8 sps:$4 sm:$0xff]  }
 0x539   :  { %1521 = vmatprep.subr.bf16.mxu1 %v3934_v23 }
 0x53c   :  { %1522 = vmatpush1.bf16.msra.mxu1 %v3932_v24 }
 0x53d   :  { %1523 = vmatprep.subr.bf16.mxu1 %v3937_v26 }
 0x540   :  { %1524 = vmatpush1.bf16.msra.mxu1 %v3935_v25 }
 0x541   :  { %1525 = vmatprep.subr.bf16.mxu1 %v3940_v27 }
 0x544   :  { %1526 = vmatpush1.bf16.msra.mxu1 %v3938_v28 }
 0x545   :  { %1527 = vmatprep.subr.bf16.mxu1 %v3943_v30 }
 0x548   :  { %1528 = vmatpush1.bf16.msra.mxu1 %v3941_v31 }
 0x549   :  { %3651 = vmatprep.subr.bf16.mxu1 %v4085_v20 }
 0x5dc   :  { %v1156_v32 = vpop.f32.mrb[16].mxu0 }
 0x5dd   :  { %v3583_v33 = vpop.f32.mrb[17].mxu0 }
 0x5de   :  { %v1068_v34 = vpop.f32.mrb[16].mxu1  ;;  %v1159_v35 = vpop.f32.mrb[18].mxu0  ;;  %v3945_v33 = vld [vmem:[%s5032_s1 + $0x20] ss:$0 sps:$4 sm:$0xff]  }
 0x5df   :  { %v1157_v36 = vadd.f32 %v1156_v32, %v1068_v34  ;;  %v3563_v37 = vpop.f32.mrb[17].mxu1  ;;  %v3584_v39 = vpop.f32.mrb[19].mxu0  ;;  %v3947_v34 = vld [vmem:[%s5033_s6 + $0x1c0] sm:$0xff]   ;;  %v3949_v35 = vld [vmem:[%s5033_s6 + $0x1c8] sm:$0xff]  }
 0x5e0   :  { %v1071_v40 = vpop.f32.mrb[18].mxu1  ;;  %v3953_v37 = vld [vmem:[%s5033_s6 + $0x1d8] sm:$0xff]   ;;  %v3955_v39 = vld [vmem:[%s5033_s6 + $0x1e0] sm:$0xff]  }
 0x5e1   :  { %v3564_v42 = vpop.f32.mrb[19].mxu1  ;;  %v3957_v40 = vld [vmem:[%s5033_s6 + $0x1e8] sm:$0xff]  }
 0x5e2   :  { %v3959_v42 = vld [vmem:[%s5033_s6 + $0x1f0] sm:$0xff]  }
 0x5fc   :  { %v1384_v44 = vpop.f32.mrb[20].mxu0 }
 0x5fd   :  { %v1385_v45 = vadd.f32 %v3003_v43, %v1384_v44  ;;  %v3623_v46 = vpop.f32.mrb[21].mxu0  ;;  %v3960_v43 = vld [vmem:[%s5033_s6 + $0x1b8] sm:$0xff]  }
 0x5fe   :  { %v1261_v47 = vpop.f32.mrb[20].mxu1  ;;  %v1387_v48 = vpop.f32.mrb[22].mxu0  ;;  %v3961_v44 = vld [vmem:[%s5033_s6 + $0x1f8] sm:$0xff]  }
 0x5ff   :  { %v3012_v50 = vmul.f32 -1.442695, %v1385_v45  ;;  %v1267_v51 = vadd.f32 %v1261_v47, %v1157_v36  ;;  %v3603_v52 = vpop.f32.mrb[21].mxu1  ;;  %v3624_v53 = vpop.f32.mrb[23].mxu0  ;;  %v3951_v36 = vld [vmem:[%s5033_s6 + $0x1d0] sm:$0xff]  }
 0x600   :  { %v1264_v54 = vpop.f32.mrb[22].mxu1  ;;  %v3963_v52 = vld [vmem:[%s5033_s6 + $0x200] sm:$0xff]  }
 0x601   :  { %4054 = vpow2.f32 %v3012_v50  ;;  %v3604_v55 = vpop.f32.mrb[23].mxu1  ;;  %v1276_v59 = vadd.f32 %v2985_v58, %v1267_v51  ;;  %v3962_v50 = vld [vmem:[%s5035_s4 + $0x80] sm:$0xff]   ;;  %v3964_v54 = vld [vmem:[%s5035_s4 + $0x88] sm:$0xff]   ;;  %v3968_v58 = vld [vmem:[%s5035_s4 + $0x98] sm:$0xff]  }
 0x602   :  { %v3965_v55 = vld [vmem:[%s5033_s6 + $0x208] sm:$0xff]  }
 0x60b   :  { %v4055_v56 = vpop.eup %4054 }
 0x60c   :  { %v1393_v57 = vadd.f32 1.0, %v4055_v56  ;;  %v3966_v56 = vld [vmem:[%s5035_s4 + $0x90] sm:$0xff]  }
 0x60e   :  { %4056 = vrcp.f32 %v1393_v57  ;;  %v3967_v57 = vld [vmem:[%s5033_s6 + $0x210] sm:$0xff]  }
 0x618   :  { %v4057_v60 = vpop.eup %4056 }
 0x619   :  { %v1396_v61 = vmul.f32 %v4057_v60, %v1276_v59  ;;  %v1397_v62 = vsub.f32 1.0, %v4057_v60  ;;  %v3969_v59 = vld [vmem:[%s5033_s6 + $0x218] sm:$0xff]   ;;  %v3970_v60 = vld [vmem:[%s5035_s4 + $0xa0] sm:$0xff]  }
 0x61b   :  { %v1398_v63 = vmul.f32 %v4451_v38, %v1397_v62  ;;  %v3946_v38 = vld [vmem:[%s5033_s6 + $0x180] sm:$0xff]   ;;  %v3972_v62 = vld [vmem:[%s5035_s4 + $0xa8] sm:$0xff]  }
 0x61d   :  { %v1399_v0 = vadd.f32 %v1398_v63, %v1396_v61  ;;  %v3971_v61 = vld [vmem:[%s5033_s6 + $0x220] sm:$0xff]   ;;  %v3973_v63 = vld [vmem:[%s5033_s6 + $0x228] sm:$0xff]  }
 0x61f   :  { %4058 = vtanh.f32 %v1399_v0  ;;  %v3974_v0 = vld [vmem:[%s5035_s4 + $0xb0] sm:$0xff]  }
 0x629   :  { %v4059_v2 = vpop.eup %4058 }
 0x62a   :  { %v4633_v3 = vadd.f32 %v4059_v2, %v4411_v11  ;;  %v3948_v11 = vld [vmem:[%s5033_s6 + $0x188] sm:$0xff]   ;;  %v3975_v2 = vld [vmem:[%s5033_s6 + $0x230] sm:$0xff]  }
 0x62c   :  { %v1402_v4 = vpack.c.bf16 %v4633_v3, %v4633_v3 }
 0x62e   :  { %1546 = vmatmul.mubr.bf16.vlgmr.msra.gmra.mrb[24].mxu1 %v1402_v4  ;;  %v3976_v4 = vld [vmem:[%s5035_s4 + $0xb8] sm:$0xff]  }
 0x62f   :  { %3667 = vmatprep.mubr.msk.bf16.mxu1 %vm4086_vm2, %v4085_v20  ;;  %3652 = vmatpush3.bf16.msra.mxu1 %v3946_v38 }
 0x630   :  { %3653 = vmatprep.subr.bf16.mxu1 %v4085_v20 }
 0x633   :  { %3654 = vmatpush3.bf16.msra.mxu1 %v3948_v11  ;;  %v3980_v11 = vld [vmem:[%s5030_s2 + $0x184] ss:$8 sps:$4 sm:$0xff]  }
 0x634   :  { %3655 = vmatprep.subr.bf16.mxu1 %v4085_v20 }
 0x637   :  { %3656 = vmatpush3.bf16.msra.mxu1 %v3950_v6  ;;  %v3978_v6 = vld [vmem:[%s5030_s2 + $0x180] ss:$8 sps:$4 sm:$0xff]  }
 0x638   :  { %3657 = vmatprep.subr.bf16.mxu1 %v4085_v20 }
 0x63b   :  { %3658 = vmatpush3.bf16.msra.mxu1 %v3952_v7  ;;  %v3983_v7 = vld [vmem:[%s5030_s2 + $0x194] ss:$8 sps:$4 sm:$0xff]  }
 0x63c   :  { %3659 = vmatprep.subr.bf16.mxu1 %v4085_v20 }
 0x63f   :  { %3660 = vmatpush3.bf16.msra.mxu1 %v3954_v8  ;;  %v3981_v8 = vld [vmem:[%s5030_s2 + $0x190] ss:$8 sps:$4 sm:$0xff]  }
 0x640   :  { %3661 = vmatprep.subr.bf16.mxu1 %v4085_v20 }
 0x643   :  { %3662 = vmatpush3.bf16.msra.mxu1 %v3956_v9  ;;  %v3984_v9 = vld [vmem:[%s5030_s2 + $0x1a0] ss:$8 sps:$4 sm:$0xff]  }
 0x644   :  { %3663 = vmatprep.subr.bf16.mxu1 %v4085_v20 }
 0x647   :  { %3664 = vmatpush3.bf16.msra.mxu1 %v3958_v10  ;;  %v3989_v10 = vld [vmem:[%s5030_s2 + $0x1b4] ss:$8 sps:$4 sm:$0xff]  }
 0x648   :  { %3665 = vmatprep.subr.bf16.mxu1 %v4085_v20 }
 0x64b   :  { %3666 = vmatpush3.bf16.msra.mxu1 %v3960_v43 }
 0x64c   :  { %3691 = vmatprep.subr.bf16.mxu1 %v4085_v20 }
 0x701   :  { %v1547_v49 = vpop.f32.mrb[24].mxu1 }
 0x702   :  { %v1549_v17 = vpop.f32.mrb[25].mxu1  ;;  %v1548_v23 = vadd.f32 %v1547_v49, %v1426_v22  ;;  %v3990_v49 = vld [vmem:[%s5030_s2 + $0x1c0] ss:$8 sps:$4 sm:$0xff]  }
 0x703   :  { %v1550_v14 = vadd.f32 %v1549_v17, %v1430_v13  ;;  %v1551_v15 = vpop.f32.mrb[26].mxu1  ;;  %v3992_v13 = vld [vmem:[%s5030_s2 + $0x1c4] ss:$8 sps:$4 sm:$0xff]   ;;  %v3993_v17 = vld [vmem:[%s5030_s2 + $0x1d0] ss:$8 sps:$4 sm:$0xff]  }
 0x704   :  { %v1552_v16 = vpop.f32.mrb[27].mxu1  ;;  %v3998_v15 = vld [vmem:[%s5030_s2 + $0x1e4] ss:$8 sps:$4 sm:$0xff]  }
 0x705   :  { %v3046_v18 = vmul.f32 -1.442695, %v1550_v14  ;;  %v3995_v14 = vld [vmem:[%s5030_s2 + $0x1d4] ss:$8 sps:$4 sm:$0xff]   ;;  %v3996_v16 = vld [vmem:[%s5030_s2 + $0x1e0] ss:$8 sps:$4 sm:$0xff]  }
 0x707   :  { %4060 = vpow2.f32 %v3046_v18  ;;  %v4001_v18 = vld [vmem:[%s5030_s2 + $0x1f4] ss:$8 sps:$4 sm:$0xff]  }
 0x711   :  { %v4061_v19 = vpop.eup %4060 }
 0x712   :  { %v1557_v21 = vadd.f32 1.0, %v4061_v19  ;;  %v3999_v19 = vld [vmem:[%s5030_s2 + $0x1f0] ss:$8 sps:$4 sm:$0xff]  }
 0x714   :  { %4062 = vrcp.f32 %v1557_v21 }
 0x71e   :  { %v4063_v24 = vpop.eup %4062 }
 0x71f   :  { %v1560_v25 = vmul.f32 %v4063_v24, %v1548_v23  ;;  %v1561_v26 = vsub.f32 1.0, %v4063_v24 }
 0x721   :  { %v1562_v27 = vmul.f32 %v1561_v26, %v4633_v3 }
 0x723   :  { %v1563_v28 = vadd.f32 %v1562_v27, %v1560_v25 }
 0x725   :  { %4064 = vtanh.f32 %v1563_v28 }
 0x72f   :  { %v4677_v30 = vpop.eup %4064 }
 0x730   :  { %v4681_v31 = vpack.c.bf16 %v4677_v30, %v4677_v30 }
 0x732   :  { %3799 = vmatprep.subr.msk.bf16.mxu0 %vm211_vm1, %v4681_v31  ;;  %v1585_v32 = vsel %vm211_vm1, %v4681_v31, 0 }
 0x733   :  { %3626 = vmatpush3.bf16.msra.mxu0 %v1585_v32  ;;  %v3145_v32 = vld [vmem:[%s5036_s5 + $0x2] ss:$0 sm:$0xff] }
 0x734   :  { %3631 = vmatprep.subr.bf16.mxu0 %v4085_v20 }
 0x736   :  { %3628 = vmatmul.mubr.msk.bf16.vlgmr.msra.gmra.mrb[24].mxu0 %vm204_vm0, %v3945_v33 }
 0x737   :  { %3632 = vmatpush3.bf16.msra.mxu0 %v3947_v34  ;;  %3647 = vmatprep.mubr.msk.bf16.mxu0 %vm4086_vm2, %v4085_v20 }
 0x738   :  { %3633 = vmatprep.subr.bf16.mxu0 %v4085_v20 }
 0x73b   :  { %3634 = vmatpush3.bf16.msra.mxu0 %v3949_v35 }
 0x73c   :  { %3635 = vmatprep.subr.bf16.mxu0 %v4085_v20 }
 0x73f   :  { %3636 = vmatpush3.bf16.msra.mxu0 %v3951_v36 }
 0x740   :  { %3637 = vmatprep.subr.bf16.mxu0 %v4085_v20 }
 0x743   :  { %3638 = vmatpush3.bf16.msra.mxu0 %v3953_v37 }
 0x744   :  { %3639 = vmatprep.subr.bf16.mxu0 %v4085_v20 }
 0x747   :  { %3640 = vmatpush3.bf16.msra.mxu0 %v3955_v39 }
 0x748   :  { %3641 = vmatprep.subr.bf16.mxu0 %v4085_v20 }
 0x74b   :  { %3642 = vmatpush3.bf16.msra.mxu0 %v3957_v40 }
 0x74c   :  { %3643 = vmatprep.subr.bf16.mxu0 %v4085_v20 }
 0x74f   :  { %3644 = vmatpush3.bf16.msra.mxu0 %v3959_v42 }
 0x750   :  { %3645 = vmatprep.subr.bf16.mxu0 %v4085_v20 }
 0x753   :  { %3646 = vmatpush3.bf16.msra.mxu0 %v3961_v44 }
 0x754   :  { %3671 = vmatprep.subr.bf16.mxu0 %v4085_v20 }
 0x809   :  { %v3629_v45 = vpop.f32.mrb[24].mxu0 }
 0x80a   :  { %v1621_v46 = vpop.f32.mrb[25].mxu0  ;;  %v1636_v38 = vpack.c.bf16 %v3629_v45, %v3629_v45 }
 0x80b   :  { %v3630_v47 = vpop.f32.mrb[26].mxu0 }
 0x80c   :  { %v1624_v48 = vpop.f32.mrb[27].mxu0 }
 0x80d   :  { %v1635_v51 = vpack.c.bf16 %v1624_v48, %v1621_v46  ;;  %v3127_v48 = vld [vmem:[%s5037_s7 + $0x2] ss:$0 sm:$0xff] }
 0x80f   :  { %v1672_v53 = vrot.slane %v1635_v51, 4  ;;  %3668 = vmatmul.mubr.bf16.vlgmr.msra.gmra.mrb[28].mxu1 %v1635_v51 }
 0x810   :  { %3692 = vmatpush3.bf16.msra.mxu1 %v3962_v50  ;;  %3707 = vmatprep.mubr.msk.bf16.mxu1 %vm4086_vm2, %v4085_v20 }
 0x811   :  { %3648 = vmatmul.mubr.bf16.vlgmr.msra.gmra.mrb[28].mxu0 %v1672_v53  ;;  %3693 = vmatprep.subr.bf16.mxu1 %v4085_v20 }
 0x812   :  { %3672 = vmatpush3.bf16.msra.mxu0 %v3963_v52  ;;  %3687 = vmatprep.mubr.msk.bf16.mxu0 %vm4086_vm2, %v4085_v20 }
 0x813   :  { %3673 = vmatprep.subr.bf16.mxu0 %v4085_v20 }
 0x814   :  { %3694 = vmatpush3.bf16.msra.mxu1 %v3964_v54 }
 0x815   :  { %3695 = vmatprep.subr.bf16.mxu1 %v4085_v20 }
 0x816   :  { %3674 = vmatpush3.bf16.msra.mxu0 %v3965_v55 }
 0x817   :  { %3675 = vmatprep.subr.bf16.mxu0 %v4085_v20 }
 0x818   :  { %3696 = vmatpush3.bf16.msra.mxu1 %v3966_v56 }
 0x819   :  { %3697 = vmatprep.subr.bf16.mxu1 %v4085_v20 }
 0x81a   :  { %3676 = vmatpush3.bf16.msra.mxu0 %v3967_v57 }
 0x81b   :  { %3677 = vmatprep.subr.bf16.mxu0 %v4085_v20 }
 0x81c   :  { %3698 = vmatpush3.bf16.msra.mxu1 %v3968_v58 }
 0x81d   :  { %3699 = vmatprep.subr.bf16.mxu1 %v4085_v20 }
 0x81e   :  { %3678 = vmatpush3.bf16.msra.mxu0 %v3969_v59  ;;  %v4002_v59 = vld [vmem:[%s5032_s1 + $0x24] sm:$0xff]  }
 0x81f   :  { %3679 = vmatprep.subr.bf16.mxu0 %v4085_v20 }
 0x820   :  { %3700 = vmatpush3.bf16.msra.mxu1 %v3970_v60  ;;  %v4008_v60 = vld [vmem:[%s5033_s6 + $0x250] sm:$0xff]  }
 0x821   :  { %3701 = vmatprep.subr.bf16.mxu1 %v4085_v20 }
 0x822   :  { %3680 = vmatpush3.bf16.msra.mxu0 %v3971_v61  ;;  %v4010_v61 = vld [vmem:[%s5033_s6 + $0x258] sm:$0xff]  }
 0x823   :  { %3681 = vmatprep.subr.bf16.mxu0 %v4085_v20 }
 0x824   :  { %3702 = vmatpush3.bf16.msra.mxu1 %v3972_v62  ;;  %v4012_v62 = vld [vmem:[%s5033_s6 + $0x260] sm:$0xff]  }
 0x825   :  { %3703 = vmatprep.subr.bf16.mxu1 %v4085_v20 }
 0x826   :  { %3682 = vmatpush3.bf16.msra.mxu0 %v3973_v63  ;;  %v4014_v63 = vld [vmem:[%s5033_s6 + $0x268] sm:$0xff]  }
 0x827   :  { %3683 = vmatprep.subr.bf16.mxu0 %v4085_v20 }
 0x828   :  { %3704 = vmatpush3.bf16.msra.mxu1 %v3974_v0  ;;  %v4016_v0 = vld [vmem:[%s5033_s6 + $0x270] sm:$0xff]  }
 0x829   :  { %3705 = vmatprep.subr.bf16.mxu1 %v4085_v20 }
 0x82a   :  { %3684 = vmatpush3.bf16.msra.mxu0 %v3975_v2  ;;  %v3171_v2 = vld [vmem:[%s5034_s3 + $0x6] sm:$0x3] }
 0x82b   :  { %3685 = vmatprep.subr.bf16.mxu0 %v4085_v20 }
 0x82c   :  { %3706 = vmatpush3.bf16.msra.mxu1 %v3976_v4  ;;  %v2118_v4 = vrot.slane %v3171_v2, %v4216_v29 }
 0x82e   :  { %3686 = vmatpush3.bf16.msra.mxu0 %v3977_v5 }
 0x82f   :  { %3708 = vmatmul.mubr.bf16.vlgmr.msra.gmra.mrb[32].mxu1 %v4681_v31  ;;  %2201 = vmatprep.subr.bf16.mxu0 %v3980_v11 }
 0x830   :  { %3713 = vmatprep.mubr.msk.bf16.mxu1 %vm204_vm0, %v4002_v59 }
 0x831   :  { %3688 = vmatmul.mubr.bf16.vlgmr.msra.gmra.mrb[32].mxu0 %v1636_v38 }
 0x832   :  { %2233 = vmatprep.mubr.bf16.mxu0 %v4084_v1  ;;  %2202 = vmatpush1.bf16.msra.mxu0 %v3978_v6  ;;  %v3986_v1 = vld [vmem:[%s5030_s2 + $0x1a4] ss:$8 sps:$4 sm:$0xff]  }
 0x833   :  { %2203 = vmatprep.subr.bf16.mxu0 %v3983_v7 }
 0x836   :  { %2204 = vmatpush1.bf16.msra.mxu0 %v3981_v8 }
 0x837   :  { %2205 = vmatprep.subr.bf16.mxu0 %v3986_v1 }
 0x83a   :  { %2206 = vmatpush1.bf16.msra.mxu0 %v3984_v9 }
 0x83b   :  { %2207 = vmatprep.subr.bf16.mxu0 %v3989_v10  ;;  %v2114_v10 = vrot.slane %v3171_v2, %v4227_v41  ;;  %v3287_v2 = vld [vmem:[%s5036_s5 + $0x3] ss:$0 sm:$0xff] }
 0x83e   :  { %2208 = vmatpush1.bf16.msra.mxu0 %v3987_v12 }
 0x83f   :  { %2209 = vmatprep.subr.bf16.mxu0 %v3992_v13 }
 0x842   :  { %2210 = vmatpush1.bf16.msra.mxu0 %v3990_v49 }
 0x843   :  { %2211 = vmatprep.subr.bf16.mxu0 %v3995_v14 }
 0x846   :  { %2212 = vmatpush1.bf16.msra.mxu0 %v3993_v17 }
 0x847   :  { %2213 = vmatprep.subr.bf16.mxu0 %v3998_v15 }
 0x84a   :  { %2214 = vmatpush1.bf16.msra.mxu0 %v3996_v16 }
 0x84b   :  { %2215 = vmatprep.subr.bf16.mxu0 %v4001_v18  ;;  %v4003_v18 = vld [vmem:[%s5032_s1 + $0x2c] ss:$0 sps:$4 sm:$0xff]  }
 0x84e   :  { %2216 = vmatpush1.bf16.msra.mxu0 %v3999_v19  ;;  %v4005_v19 = vld [vmem:[%s5033_s6 + $0x280] sm:$0xff]  }
 0x84f   :  { %3737 = vmatprep.subr.bf16.mxu0 %v4085_v20 }
 0x8e2   :  { %v1844_v21 = vpop.f32.mrb[28].mxu1 }
 0x8e3   :  { %v3669_v22 = vpop.f32.mrb[29].mxu1 }
 0x8e4   :  { %v1756_v23 = vpop.f32.mrb[28].mxu0  ;;  %v1847_v24 = vpop.f32.mrb[30].mxu1  ;;  %v4009_v22 = vld [vmem:[%s5033_s6 + $0x290] sm:$0xff]  }
 0x8e5   :  { %v1845_v25 = vadd.f32 %v1844_v21, %v1756_v23  ;;  %v3649_v26 = vpop.f32.mrb[29].mxu0  ;;  %v3670_v27 = vpop.f32.mrb[31].mxu1  ;;  %v4007_v21 = vld [vmem:[%s5033_s6 + $0x288] sm:$0xff]   ;;  %v4011_v23 = vld [vmem:[%s5033_s6 + $0x298] sm:$0xff]   ;;  %v4013_v24 = vld [vmem:[%s5033_s6 + $0x2a0] sm:$0xff]  }
 0x8e6   :  { %v1759_v28 = vpop.f32.mrb[30].mxu0  ;;  %v4017_v26 = vld [vmem:[%s5033_s6 + $0x2b0] sm:$0xff]   ;;  %v4018_v27 = vld [vmem:[%s5033_s6 + $0x278] sm:$0xff]  }
 0x8e7   :  { %v3650_v31 = vpop.f32.mrb[31].mxu0  ;;  %v4019_v28 = vld [vmem:[%s5033_s6 + $0x2b8] sm:$0xff]  }
 0x902   :  { %v2072_v33 = vpop.f32.mrb[32].mxu1 }
 0x903   :  { %v2073_v34 = vadd.f32 %v3145_v32, %v2072_v33  ;;  %v3709_v35 = vpop.f32.mrb[33].mxu1 }
 0x904   :  { %v1949_v36 = vpop.f32.mrb[32].mxu0  ;;  %v2075_v37 = vpop.f32.mrb[34].mxu1  ;;  %v4020_v35 = vld [vmem:[%s5035_s4 + $0xc0] sm:$0xff]  }
 0x905   :  { %v3154_v39 = vmul.f32 -1.442695, %v2073_v34  ;;  %v1955_v40 = vadd.f32 %v1949_v36, %v1845_v25  ;;  %v3689_v42 = vpop.f32.mrb[33].mxu0  ;;  %v3710_v43 = vpop.f32.mrb[35].mxu1  ;;  %v4015_v25 = vld [vmem:[%s5033_s6 + $0x2a8] sm:$0xff]   ;;  %v4021_v37 = vld [vmem:[%s5033_s6 + $0x2c0] sm:$0xff]  }
 0x906   :  { %v1952_v44 = vpop.f32.mrb[34].mxu0  ;;  %v4023_v42 = vld [vmem:[%s5033_s6 + $0x2c8] sm:$0xff]   ;;  %v4024_v43 = vld [vmem:[%s5035_s4 + $0xd0] sm:$0xff]  }
 0x907   :  { %4066 = vpow2.f32 %v3154_v39  ;;  %v3690_v45 = vpop.f32.mrb[35].mxu0  ;;  %v1964_v50 = vadd.f32 %v3127_v48, %v1955_v40  ;;  %v4022_v40 = vld [vmem:[%s5035_s4 + $0xc8] sm:$0xff]   ;;  %v4025_v44 = vld [vmem:[%s5033_s6 + $0x2d0] sm:$0xff]   ;;  %v4029_v48 = vld [vmem:[%s5033_s6 + $0x2e0] sm:$0xff]  }
 0x908   :  { %v4026_v45 = vld [vmem:[%s5035_s4 + $0xd8] sm:$0xff]  }
 0x911   :  { %v4067_v46 = vpop.eup %4066 }
 0x912   :  { %v2081_v47 = vadd.f32 1.0, %v4067_v46  ;;  %v4027_v46 = vld [vmem:[%s5033_s6 + $0x2d8] sm:$0xff]  }
 0x914   :  { %4068 = vrcp.f32 %v2081_v47  ;;  %v4028_v47 = vld [vmem:[%s5035_s4 + $0xe0] sm:$0xff]  }
 0x91e   :  { %v4069_v51 = vpop.eup %4068 }
 0x91f   :  { %v2084_v52 = vmul.f32 %v4069_v51, %v1964_v50  ;;  %v2085_v53 = vsub.f32 1.0, %v4069_v51  ;;  %v4030_v50 = vld [vmem:[%s5035_s4 + $0xe8] sm:$0xff]  }
 0x920   :  { %v4031_v51 = vld [vmem:[%s5033_s6 + $0x2e8] sm:$0xff]  }
 0x921   :  { %v2086_v54 = vmul.f32 %v4677_v30, %v2085_v53  ;;  %v4004_v30 = vld [vmem:[%s5033_s6 + $0x240] sm:$0xff]   ;;  %v4033_v53 = vld [vmem:[%s5033_s6 + $0x2f0] sm:$0xff]  }
 0x923   :  { %v2087_v55 = vadd.f32 %v2086_v54, %v2084_v52  ;;  %v4032_v52 = vld [vmem:[%s5035_s4 + $0xf0] sm:$0xff]   ;;  %v4034_v54 = vld [vmem:[%s5035_s4 + $0xf8] sm:$0xff]  }
 0x925   :  { %4070 = vtanh.f32 %v2087_v55  ;;  %v4035_v55 = vld [vmem:[%s5033_s6 + $0x2f8] sm:$0xff]  }
 0x92f   :  { %v4071_v56 = vpop.eup %4070 }
 0x930   :  { %v4855_v57 = vadd.f32 %v4071_v56, %v4633_v3  ;;  %v4006_v3 = vld [vmem:[%s5033_s6 + $0x248] sm:$0xff]  }
 0x932   :  { %v2090_v58 = vpack.c.bf16 %v4855_v57, %v4855_v57 }
 0x934   :  { %2234 = vmatmul.mubr.bf16.vlgmr.msra.gmra.mrb[36].mxu0 %v2090_v58 }
 0x935   :  { %3753 = vmatprep.mubr.msk.bf16.mxu0 %vm4086_vm2, %v4085_v20  ;;  %3738 = vmatpush3.bf16.msra.mxu0 %v4004_v30 }
 0x936   :  { %3739 = vmatprep.subr.bf16.mxu0 %v4085_v20 }
 0x939   :  { %3740 = vmatpush3.bf16.msra.mxu0 %v4006_v3 }
 0x93a   :  { %3741 = vmatprep.subr.bf16.mxu0 %v4085_v20 }
 0x93d   :  { %3742 = vmatpush3.bf16.msra.mxu0 %v4008_v60 }
 0x93e   :  { %3743 = vmatprep.subr.bf16.mxu0 %v4085_v20 }
 0x941   :  { %3744 = vmatpush3.bf16.msra.mxu0 %v4010_v61 }
 0x942   :  { %3745 = vmatprep.subr.bf16.mxu0 %v4085_v20 }
 0x945   :  { %3746 = vmatpush3.bf16.msra.mxu0 %v4012_v62 }
 0x946   :  { %3747 = vmatprep.subr.bf16.mxu0 %v4085_v20 }
 0x949   :  { %3748 = vmatpush3.bf16.msra.mxu0 %v4014_v63 }
 0x94a   :  { %3749 = vmatprep.subr.bf16.mxu0 %v4085_v20 }
 0x94d   :  { %3750 = vmatpush3.bf16.msra.mxu0 %v4016_v0 }
 0x94e   :  { %3751 = vmatprep.subr.bf16.mxu0 %v4085_v20 }
 0x951   :  { %3752 = vmatpush3.bf16.msra.mxu0 %v4018_v27 }
 0x952   :  { %3777 = vmatprep.subr.bf16.mxu0 %v4085_v20 }
 0xa07   :  { %v2235_v5 = vpop.f32.mrb[36].mxu0 }
 0xa08   :  { %v2237_v38 = vpop.f32.mrb[37].mxu0  ;;  %v2236_v12 = vadd.f32 %v2235_v5, %v2114_v10 }
 0xa09   :  { %v2238_v11 = vadd.f32 %v2237_v38, %v2118_v4  ;;  %v2239_v6 = vpop.f32.mrb[38].mxu0 }
 0xa0a   :  { %v2240_v7 = vpop.f32.mrb[39].mxu0 }
 0xa0b   :  { %v3188_v8 = vmul.f32 -1.442695, %v2238_v11 }
 0xa0d   :  { %4072 = vpow2.f32 %v3188_v8 }
 0xa17   :  { %v4073_v1 = vpop.eup %4072 }
 0xa18   :  { %v2245_v9 = vadd.f32 1.0, %v4073_v1 }
 0xa1a   :  { %4074 = vrcp.f32 %v2245_v9 }
 0xa24   :  { %v4075_v13 = vpop.eup %4074 }
 0xa25   :  { %v2248_v49 = vmul.f32 %v4075_v13, %v2236_v12  ;;  %v2249_v17 = vsub.f32 1.0, %v4075_v13 }
 0xa27   :  { %v2250_v14 = vmul.f32 %v2249_v17, %v4855_v57 }
 0xa29   :  { %v2251_v15 = vadd.f32 %v2250_v14, %v2248_v49  ;;  %v3269_v49 = vld [vmem:[%s5037_s7 + $0x3] ss:$0 sm:$0xff] }
 0xa2b   :  { %4076 = vtanh.f32 %v2251_v15 }
 0xa35   :  { %v4899_v29 = vpop.eup %4076 }
 0xa36   :  { %v4903_v16 = vpack.c.bf16 %v4899_v29, %v4899_v29 }
 0xa38   :  { %3800 = vmatprep.subr.msk.bf16.mxu1 %vm211_vm1, %v4903_v16  ;;  %v2273_v41 = vsel %vm211_vm1, %v4903_v16, 0 }
 0xa39   :  { %3712 = vmatpush3.bf16.msra.mxu1 %v2273_v41 }
 0xa3a   :  { %3717 = vmatprep.subr.bf16.mxu1 %v4085_v20 }
 0xa3c   :  { %3714 = vmatmul.mubr.msk.bf16.vlgmr.msra.gmra.mrb[36].mxu1 %vm204_vm0, %v4003_v18 }
 0xa3d   :  { %3718 = vmatpush3.bf16.msra.mxu1 %v4005_v19  ;;  %3733 = vmatprep.mubr.msk.bf16.mxu1 %vm4086_vm2, %v4085_v20 }
 0xa3e   :  { %3719 = vmatprep.subr.bf16.mxu1 %v4085_v20 }
 0xa41   :  { %3720 = vmatpush3.bf16.msra.mxu1 %v4007_v21 }
 0xa42   :  { %3721 = vmatprep.subr.bf16.mxu1 %v4085_v20 }
 0xa45   :  { %3722 = vmatpush3.bf16.msra.mxu1 %v4009_v22 }
 0xa46   :  { %3723 = vmatprep.subr.bf16.mxu1 %v4085_v20 }
 0xa49   :  { %3724 = vmatpush3.bf16.msra.mxu1 %v4011_v23 }
 0xa4a   :  { %3725 = vmatprep.subr.bf16.mxu1 %v4085_v20 }
 0xa4d   :  { %3726 = vmatpush3.bf16.msra.mxu1 %v4013_v24 }
 0xa4e   :  { %3727 = vmatprep.subr.bf16.mxu1 %v4085_v20 }
 0xa51   :  { %3728 = vmatpush3.bf16.msra.mxu1 %v4015_v25 }
 0xa52   :  { %3729 = vmatprep.subr.bf16.mxu1 %v4085_v20 }
 0xa55   :  { %3730 = vmatpush3.bf16.msra.mxu1 %v4017_v26 }
 0xa56   :  { %3731 = vmatprep.subr.bf16.mxu1 %v4085_v20 }
 0xa59   :  { %3732 = vmatpush3.bf16.msra.mxu1 %v4019_v28 }
 0xa5a   :  { %3757 = vmatprep.subr.bf16.mxu1 %v4085_v20 }
 0xb0f   :  { %v3715_v31 = vpop.f32.mrb[36].mxu1 }
 0xb10   :  { %v2309_v32 = vpop.f32.mrb[37].mxu1  ;;  %v2324_v56 = vpack.c.bf16 %v3715_v31, %v3715_v31 }
 0xb11   :  { %v3716_v33 = vpop.f32.mrb[38].mxu1 }
 0xb12   :  { %v2312_v34 = vpop.f32.mrb[39].mxu1 }
 0xb13   :  { %v2323_v36 = vpack.c.bf16 %v2312_v34, %v2309_v32 }
 0xb15   :  { %v2360_v39 = vrot.slane %v2323_v36, 4  ;;  %3754 = vmatmul.mubr.bf16.vlgmr.msra.gmra.mrb[40].mxu0 %v2323_v36 }
 0xb16   :  { %3778 = vmatpush3.bf16.msra.mxu0 %v4020_v35  ;;  %3793 = vmatprep.mubr.msk.bf16.mxu0 %vm4086_vm2, %v4085_v20 }
 0xb17   :  { %3734 = vmatmul.mubr.bf16.vlgmr.msra.gmra.mrb[40].mxu1 %v2360_v39  ;;  %3779 = vmatprep.subr.bf16.mxu0 %v4085_v20 }
 0xb18   :  { %3758 = vmatpush3.bf16.msra.mxu1 %v4021_v37  ;;  %3773 = vmatprep.mubr.msk.bf16.mxu1 %vm4086_vm2, %v4085_v20 }
 0xb19   :  { %3759 = vmatprep.subr.bf16.mxu1 %v4085_v20 }
 0xb1a   :  { %3780 = vmatpush3.bf16.msra.mxu0 %v4022_v40 }
 0xb1b   :  { %3781 = vmatprep.subr.bf16.mxu0 %v4085_v20 }
 0xb1c   :  { %3760 = vmatpush3.bf16.msra.mxu1 %v4023_v42 }
 0xb1d   :  { %3761 = vmatprep.subr.bf16.mxu1 %v4085_v20 }
 0xb1e   :  { %3782 = vmatpush3.bf16.msra.mxu0 %v4024_v43 }
 0xb1f   :  { %3783 = vmatprep.subr.bf16.mxu0 %v4085_v20 }
 0xb20   :  { %3762 = vmatpush3.bf16.msra.mxu1 %v4025_v44 }
 0xb21   :  { %3763 = vmatprep.subr.bf16.mxu1 %v4085_v20 }
 0xb22   :  { %3784 = vmatpush3.bf16.msra.mxu0 %v4026_v45 }
 0xb23   :  { %3785 = vmatprep.subr.bf16.mxu0 %v4085_v20 }
 0xb24   :  { %3764 = vmatpush3.bf16.msra.mxu1 %v4027_v46 }
 0xb25   :  { %3765 = vmatprep.subr.bf16.mxu1 %v4085_v20 }
 0xb26   :  { %3786 = vmatpush3.bf16.msra.mxu0 %v4028_v47 }
 0xb27   :  { %3787 = vmatprep.subr.bf16.mxu0 %v4085_v20 }
 0xb28   :  { %3766 = vmatpush3.bf16.msra.mxu1 %v4029_v48 }
 0xb29   :  { %3767 = vmatprep.subr.bf16.mxu1 %v4085_v20 }
 0xb2a   :  { %3788 = vmatpush3.bf16.msra.mxu0 %v4030_v50 }
 0xb2b   :  { %3789 = vmatprep.subr.bf16.mxu0 %v4085_v20 }
 0xb2c   :  { %3768 = vmatpush3.bf16.msra.mxu1 %v4031_v51 }
 0xb2d   :  { %3769 = vmatprep.subr.bf16.mxu1 %v4085_v20 }
 0xb2e   :  { %3790 = vmatpush3.bf16.msra.mxu0 %v4032_v52 }
 0xb2f   :  { %3791 = vmatprep.subr.bf16.mxu0 %v4085_v20 }
 0xb30   :  { %3770 = vmatpush3.bf16.msra.mxu1 %v4033_v53 }
 0xb31   :  { %3771 = vmatprep.subr.bf16.mxu1 %v4085_v20 }
 0xb32   :  { %3792 = vmatpush3.bf16.msra.mxu0 %v4034_v54 }
 0xb34   :  { %3772 = vmatpush3.bf16.msra.mxu1 %v4035_v55 }
 0xb35   :  { %3794 = vmatmul.mubr.bf16.vlgmr.msra.gmra.mrb[44].mxu0 %v4903_v16 }
 0xb37   :  { %3774 = vmatmul.mubr.bf16.vlgmr.msra.gmra.mrb[44].mxu1 %v2324_v56 }
 0xbe8   :  { %v2532_v58 = vpop.f32.mrb[40].mxu0 }
 0xbe9   :  { %v3755_v59 = vpop.f32.mrb[41].mxu0 }
 0xbea   :  { %v2444_v30 = vpop.f32.mrb[40].mxu1  ;;  %v2535_v3 = vpop.f32.mrb[42].mxu0 }
 0xbeb   :  { %v2533_v60 = vadd.f32 %v2532_v58, %v2444_v30  ;;  %v3735_v61 = vpop.f32.mrb[41].mxu1  ;;  %v3756_v62 = vpop.f32.mrb[43].mxu0 }
 0xbec   :  { %v2447_v63 = vpop.f32.mrb[42].mxu1 }
 0xbed   :  { %v3736_v0 = vpop.f32.mrb[43].mxu1 }
 0xc08   :  { %v2760_v20 = vpop.f32.mrb[44].mxu0 }
 0xc09   :  { %v2761_v4 = vadd.f32 %v3287_v2, %v2760_v20  ;;  %v3795_v5 = vpop.f32.mrb[45].mxu0 }
 0xc0a   :  { %v2637_v38 = vpop.f32.mrb[44].mxu1  ;;  %v2763_v11 = vpop.f32.mrb[46].mxu0 }
 0xc0b   :  { %v3296_v6 = vmul.f32 -1.442695, %v2761_v4  ;;  %v2643_v7 = vadd.f32 %v2637_v38, %v2533_v60  ;;  %v3775_v8 = vpop.f32.mrb[45].mxu1  ;;  %v3796_v1 = vpop.f32.mrb[47].mxu0 }
 0xc0c   :  { %v2640_v9 = vpop.f32.mrb[46].mxu1 }
 0xc0d   :  { %4078 = vpow2.f32 %v3296_v6  ;;  %v3776_v10 = vpop.f32.mrb[47].mxu1  ;;  %v2652_v17 = vadd.f32 %v3269_v49, %v2643_v7 }
 0xc17   :  { %v4079_v12 = vpop.eup %4078 }
 0xc18   :  { %v2769_v13 = vadd.f32 1.0, %v4079_v12 }
 0xc1a   :  { %4080 = vrcp.f32 %v2769_v13 }
 0xc24   :  { %v4081_v14 = vpop.eup %4080 }
 0xc25   :  { %v2772_v15 = vmul.f32 %v4081_v14, %v2652_v17  ;;  %v2773_v16 = vsub.f32 1.0, %v4081_v14 }
 0xc27   :  { %v2774_v41 = vmul.f32 %v4899_v29, %v2773_v16 }
 0xc29   :  { %v2775_v18 = vadd.f32 %v2774_v41, %v2772_v15 }
 0xc2b   :  { %4082 = vtanh.f32 %v2775_v18 }
 0xc35   :  { %v4083_v19 = vpop.eup %4082 }
 0xc36   :  { %v2777_v21 = vadd.f32 %v4083_v19, %v4855_v57 }
 0xc38   :  { %2778 = vst [vmem:[%s5038_s8] sm:$0xff] %v2777_v21 }

</bundles_post_ra>
